<compile_context>
chip_gen: v6e
topology: v6e:2x2x1
jax: 0.10.0
libtpu: 0.0.40
codegen_flags: <defaults>
</compile_context>

<pallas_src>
import functools

import jax
import jax.numpy as jnp
from jax.experimental import pallas as pl
from jax.experimental.pallas import tpu as pltpu

EPS = 1e-5  # PyTorch BatchNorm default


def _round_up(x, m):
    return ((x + m - 1) // m) * m


# ----------------------------- Pallas kernel ------------------------------ #

def sweetconv_kernel(x_ref, w1_ref, b1_ref, w2_ref, b2_ref, w3_ref, b3_ref,
                     wfc1_ref, bfc1_ref, wfc2_ref, bfc2_ref,
                     out_ref, pad_ref, *, L, B):
    """One grid step processes B samples (batch dense on lanes).

    x_ref:    (C0, (L+2)*B)  bf16, columns ordered l_padded*B + b, zero L-halos
    w*_ref:   (Cout, 3*Cin)  folded conv+BN weights, col = k*Cin + ci (bf16)
    b*_ref:   (Cout, 1)      folded biases (f32)
    wfc1_ref: (Hfc, L*H)     folded fc1+BN weights, col = l*H + c (bf16)
    wfc2_ref: (Cout, Hfc)    (bf16)
    out_ref:  (Cout, B)      f32, lane-dense
    pad_ref:  (H, (L+2)*B)   bf16 canonical activation scratch (halo-padded)
    """
    LB = L * B
    H = pad_ref.shape[0]

    # Zero the halo column-groups of the canonical activation scratch (once).
    halo = jnp.zeros((H, B), pad_ref.dtype)
    pad_ref[:, pl.ds(0, B)] = halo
    pad_ref[:, pl.ds((L + 1) * B, B)] = halo

    def conv_bn_relu(src_ref, w_ref, b_ref):
        # Fused 3-tap conv as a single matmul with K = 3*Cin, N = L*B.
        xs = jnp.concatenate([src_ref[:, pl.ds(0, LB)],        # tap k=0 (l-1)
                              src_ref[:, pl.ds(B, LB)],        # tap k=1 (l)
                              src_ref[:, pl.ds(2 * B, LB)]],   # tap k=2 (l+1)
                             axis=0)
        y = jnp.dot(w_ref[...], xs.astype(w_ref.dtype),
                    preferred_element_type=jnp.float32)
        y = jnp.maximum(y + b_ref[...], 0.0)                   # f32 epilogue
        pad_ref[:, pl.ds(B, LB)] = y.astype(pad_ref.dtype)     # bf16 store

    conv_bn_relu(x_ref, w1_ref, b1_ref)      # layer 1 (input block has halos)
    conv_bn_relu(pad_ref, w2_ref, b2_ref)    # layer 2 (reads & rewrites scratch)
    conv_bn_relu(pad_ref, w3_ref, b3_ref)    # layer 3

    # fc1 + folded bn4 + ReLU: ONE matmul with K = L*H (row of hs = l*H + c).
    hs = jnp.concatenate(
        [pad_ref[:, pl.ds((l + 1) * B, B)] for l in range(L)], axis=0)  # (L*H, B)
    z = jnp.dot(wfc1_ref[...], hs.astype(wfc1_ref.dtype),
                preferred_element_type=jnp.float32)
    z = jnp.maximum(z + bfc1_ref[...], 0.0)                    # (Hfc, B) f32

    # fc2 + ReLU (lane-dense output block).
    out = jnp.dot(wfc2_ref[...], z.astype(wfc2_ref.dtype),
                  preferred_element_type=jnp.float32)
    out_ref[...] = jnp.maximum(out + bfc2_ref[...], 0.0)       # (Cout, B)


def sweetconv_forward(x_ncl, params, *, block_b=512, act_dtype=jnp.bfloat16,
                      vmem_limit_bytes=None):
    """x_ncl: (N, Cin, L) f32 (PyTorch NCL layout); params from fold_params."""
    (w1, b1, w2, b2, w3, b3, wfc1, bfc1, wfc2, bfc2) = params
    N, C0, L = x_ncl.shape
    H = w1.shape[0]
    Cout = wfc2.shape[0]

    assert block_b % 128 == 0 and block_b >= 128, "block_b must be a multiple of 128"
    # Lane-aligned B; guarantee >=2 grid steps when possible (v7x: 2 TensorCores).
    B = max(128, min(block_b, _round_up(pl.cdiv(N, 2), 128)))
    NB = pl.cdiv(N, B)
    Np = NB * B

    # Pack to batch-in-lanes slabs with zero L-halos:
    #   (N,C,L) -> pad N -> (NB,B,C,L) -> (NB,C,L,B) -> pad L by 1 each side
    #   -> (NB, C, (L+2)*B), column inside a block = l_padded*B + b.
    xp = jnp.pad(x_ncl, ((0, Np - N), (0, 0), (0, 0)))
    xp = xp.reshape(NB, B, C0, L).transpose(0, 2, 3, 1)        # (NB, C, L, B)
    xp = jnp.pad(xp, ((0, 0), (0, 0), (1, 1), (0, 0)))         # (NB, C, L+2, B)
    x_packed = xp.reshape(NB, C0, (L + 2) * B).astype(act_dtype)
    # TODO(synk): fold this repack into the kernel (or cache the packed form
    # across calls) to save the extra HBM pass over the input.

    def full_spec(a):  # whole (small) array resident in VMEM
        return pl.BlockSpec(a.shape, lambda i, nd=a.ndim: (0,) * nd)

    grid_spec = pltpu.PrefetchScalarGridSpec(
        num_scalar_prefetch=0,
        grid=(NB,),
        in_specs=[pl.BlockSpec((pl.Squeezed(), C0, (L + 2) * B),
                               lambda i: (i, 0, 0))]
                 + [full_spec(a) for a in params],
        out_specs=pl.BlockSpec((pl.Squeezed(), Cout, B), lambda i: (i, 0, 0)),
        scratch_shapes=[pltpu.VMEM((H, (L + 2) * B), act_dtype)],
    )
    out = pl.pallas_call(
        functools.partial(sweetconv_kernel, L=L, B=B),
        out_shape=jax.ShapeDtypeStruct((NB, Cout, B), jnp.float32),
        grid_spec=grid_spec,
        compiler_params=pltpu.CompilerParams(
            dimension_semantics=("parallel",),     # batch axis shardable across TCs
            vmem_limit_bytes=vmem_limit_bytes),    # set when pushing B very high
    )(x_packed, *params)
    # (NB, Cout, B) -> (N, Cout)
    return out.transpose(0, 2, 1).reshape(Np, Cout)[:N]


# ------------------------- parameter setup (glue) -------------------------- #

def init_pt_params(key, c0, h, l, hfc, cout):
    """Deterministic PyTorch-shaped parameters (synthetic, no checkpoint)."""
    ks = jax.random.split(key, 26)
    nrm = lambda k, s: 0.1 * jax.random.normal(k, s, jnp.float32)
    pos = lambda k, s: 0.5 + jax.random.uniform(k, s, jnp.float32)
    p = {}
    for idx, (ci, name) in enumerate([(c0, "1"), (h, "2"), (h, "3")]):
        o = idx * 6
        p["w" + name] = nrm(ks[o + 0], (h, ci, 3))   # Conv1d weight (O, I, K)
        p["cb" + name] = nrm(ks[o + 1], (h,))        # Conv1d bias
        p["g" + name] = pos(ks[o + 2], (h,))         # BN gamma
        p["be" + name] = nrm(ks[o + 3], (h,))        # BN beta
        p["m" + name] = nrm(ks[o + 4], (h,))         # BN running mean
        p["v" + name] = pos(ks[o + 5], (h,))         # BN running var
    p["wfc1"] = nrm(ks[18], (hfc, h * l)); p["bfc1"] = nrm(ks[19], (hfc,))
    p["g4"] = pos(ks[20], (hfc,)); p["be4"] = nrm(ks[21], (hfc,))
    p["m4"] = nrm(ks[22], (hfc,)); p["v4"] = pos(ks[23], (hfc,))
    p["wfc2"] = nrm(ks[24], (cout, hfc)); p["bfc2"] = nrm(ks[25], (cout,))
    return p


def fold_params(p, h, l, mxu_dtype=jnp.bfloat16):
    """Fold eval-mode BN into conv/fc weights; re-layout for the fused kernel.

    MXU operands (weights) are stored in `mxu_dtype` (bf16); biases and all
    element-wise math stay f32.
    """
    def fold_conv(w_pt, b_pt, g, be, m, v):
        scale = g / jnp.sqrt(v + EPS)                            # (Cout,)
        w = w_pt * scale[:, None, None]                          # (O, I, K)
        w = jnp.transpose(w, (0, 2, 1)).reshape(w.shape[0], -1)  # (O, 3*I), col=k*I+i
        b = ((b_pt - m) * scale + be)[:, None]                   # (O, 1)
        return w.astype(mxu_dtype), b

    w1, b1 = fold_conv(p["w1"], p["cb1"], p["g1"], p["be1"], p["m1"], p["v1"])
    w2, b2 = fold_conv(p["w2"], p["cb2"], p["g2"], p["be2"], p["m2"], p["v2"])
    w3, b3 = fold_conv(p["w3"], p["cb3"], p["g3"], p["be3"], p["m3"], p["v3"])

    scale4 = p["g4"] / jnp.sqrt(p["v4"] + EPS)                   # (Hfc,)
    wfc1 = p["wfc1"] * scale4[:, None]                           # (Hfc, H*L), col = c*L+l
    hfc = wfc1.shape[0]
    wfc1 = wfc1.reshape(hfc, h, l)                               # (Hfc, H, L)
    wfc1 = jnp.transpose(wfc1, (0, 2, 1)).reshape(hfc, l * h)    # col = l*H + c
    bfc1 = ((p["bfc1"] - p["m4"]) * scale4 + p["be4"])[:, None]  # (Hfc, 1)

    wfc2 = p["wfc2"]                                             # (Cout, Hfc)
    bfc2 = p["bfc2"][:, None]                                    # (Cout, 1)
    return (w1, b1, w2, b2, w3, b3,
            wfc1.astype(mxu_dtype), bfc1, wfc2.astype(mxu_dtype), bfc2)


# --------------------------- pure-JAX reference ---------------------------- #

def ref_forward_ncl(x_ncl, p):
    """Reference in PyTorch NCL layout with un-folded f32 params (eval mode)."""
    hi = jax.lax.Precision.HIGHEST

    def conv1d(x, w, b):
        y = jax.lax.conv_general_dilated(
            x, w, window_strides=(1,), padding="SAME",
            dimension_numbers=("NCH", "OIH", "NCH"), precision=hi)
        return y + b[None, :, None]

    def bn_ncl(x, g, be, m, v):
        return ((x - m[None, :, None]) / jnp.sqrt(v[None, :, None] + EPS)
                * g[None, :, None] + be[None, :, None])

    h = jax.nn.relu(bn_ncl(conv1d(x_ncl, p["w1"], p["cb1"]),
                           p["g1"], p["be1"], p["m1"], p["v1"]))
    h = jax.nn.relu(bn_ncl(conv1d(h, p["w2"], p["cb2"]),
                           p["g2"], p["be2"], p["m2"], p["v2"]))
    h = jax.nn.relu(bn_ncl(conv1d(h, p["w3"], p["cb3"]),
                           p["g3"], p["be3"], p["m3"], p["v3"]))
    flat = h.reshape(h.shape[0], -1)                             # (N, H*L), c*L+l
    z = flat @ p["wfc1"].T + p["bfc1"]
    z = (z - p["m4"]) / jnp.sqrt(p["v4"] + EPS) * p["g4"] + p["be4"]
    z = jax.nn.relu(z)
    return jax.nn.relu(z @ p["wfc2"].T + p["bfc2"])


# ----------------------------------- main ---------------------------------- #

if __name__ == "__main__":
    # Scaled-down but structure-preserving config of SweetConv defaults:
    #   in_channels=8, hidden=16, window_size=13, kernel=3, hidden_fc=32, out=2
    # Batch chosen so the default and explicit block sizes give multi-step grids.
    N, C0, L = 300, 8, 13
    H, HFC, COUT = 16, 32, 2

    root = jax.random.PRNGKey(0)
    kparam, kx = jax.random.split(root)
    pt_params = init_pt_params(kparam, C0, H, L, HFC, COUT)
    x_ncl = jax.random.normal(kx, (N, C0, L), jnp.float32)      # PyTorch NCL layout

    folded = fold_params(pt_params, H, L)                       # bf16 MXU weights

    # Default block size (B=256, 2 grid steps) and a smaller one (B=128, 3 steps):
    out = jax.block_until_ready(sweetconv_forward(x_ncl, folded))
    out_small = jax.block_until_ready(sweetconv_forward(x_ncl, folded, block_b=128))
    ref = jax.block_until_ready(ref_forward_ncl(x_ncl, pt_params))

    assert out.shape == (N, COUT), out.shape
    if not jnp.allclose(out, out_small, atol=1e-5, rtol=1e-5):
        raise AssertionError(f"block-size mismatch:\n{out[:4]}\n{out_small[:4]}")
    # bf16 MXU operands + bf16 packed input vs f32 reference -> relaxed tolerance.
    if not jnp.allclose(out, ref, atol=3e-2, rtol=3e-2):
        err = jnp.max(jnp.abs(out - ref))
        raise AssertionError(f"mismatch (max abs err {err}):\n{out[:4]}\n{ref[:4]}")
    print("KERNEL_OK")
</pallas_src>

<mosaic_0001>
module attributes {stable_mosaic.version = 11 : i64} {
  func.func @sweetconv_kernel(%arg0: i32, %arg1: memref<1x8x3840xbf16, #tpu.memory_space<vmem>>, %arg2: memref<16x24xbf16, #tpu.memory_space<vmem>>, %arg3: memref<16x1xf32, #tpu.memory_space<vmem>>, %arg4: memref<16x48xbf16, #tpu.memory_space<vmem>>, %arg5: memref<16x1xf32, #tpu.memory_space<vmem>>, %arg6: memref<16x48xbf16, #tpu.memory_space<vmem>>, %arg7: memref<16x1xf32, #tpu.memory_space<vmem>>, %arg8: memref<32x208xbf16, #tpu.memory_space<vmem>>, %arg9: memref<32x1xf32, #tpu.memory_space<vmem>>, %arg10: memref<2x32xbf16, #tpu.memory_space<vmem>>, %arg11: memref<2x1xf32, #tpu.memory_space<vmem>>, %arg12: memref<1x2x256xf32, #tpu.memory_space<vmem>>, %arg13: memref<16x3840xbf16, #tpu.memory_space<vmem>>) attributes {dimension_semantics = [#tpu.dimension_semantics<parallel>], iteration_bounds = array<i64: 2>, scalar_prefetch = 0 : i64, scratch_operands = 1 : i64, tpu.core_type = #tpu.core_type<tc>, window_params = [{transform_indices = @transform_0, window_bounds = array<i64: 1, 8, 3840>}, {pipeline_mode = #tpu.pipeline_mode<synchronous>, transform_indices = @transform_1, window_bounds = array<i64: 16, 24>}, {pipeline_mode = #tpu.pipeline_mode<synchronous>, transform_indices = @transform_2, window_bounds = array<i64: 16, 1>}, {pipeline_mode = #tpu.pipeline_mode<synchronous>, transform_indices = @transform_3, window_bounds = array<i64: 16, 48>}, {pipeline_mode = #tpu.pipeline_mode<synchronous>, transform_indices = @transform_4, window_bounds = array<i64: 16, 1>}, {pipeline_mode = #tpu.pipeline_mode<synchronous>, transform_indices = @transform_5, window_bounds = array<i64: 16, 48>}, {pipeline_mode = #tpu.pipeline_mode<synchronous>, transform_indices = @transform_6, window_bounds = array<i64: 16, 1>}, {pipeline_mode = #tpu.pipeline_mode<synchronous>, transform_indices = @transform_7, window_bounds = array<i64: 32, 208>}, {pipeline_mode = #tpu.pipeline_mode<synchronous>, transform_indices = @transform_8, window_bounds = array<i64: 32, 1>}, {pipeline_mode = #tpu.pipeline_mode<synchronous>, transform_indices = @transform_9, window_bounds = array<i64: 2, 32>}, {pipeline_mode = #tpu.pipeline_mode<synchronous>, transform_indices = @transform_10, window_bounds = array<i64: 2, 1>}, {transform_indices = @transform_11, window_bounds = array<i64: 1, 2, 256>}]} {
    %cst = arith.constant 0.000000e+00 : bf16
    %0 = vector.broadcast %cst : bf16 to vector<16x256xbf16>
    %c0 = arith.constant 0 : index
    %c0_0 = arith.constant 0 : index
    %1 = vector.load %arg13[%c0, %c0_0] : memref<16x3840xbf16, #tpu.memory_space<vmem>>, vector<16x256xbf16>
    tpu.vector_store %arg13[%c0, %c0_0], %0 {strides = array<i32>} : memref<16x3840xbf16, #tpu.memory_space<vmem>>, vector<16x256xbf16>,
    %c0_1 = arith.constant 0 : index
    %c3584 = arith.constant 3584 : index
    %2 = vector.load %arg13[%c0_1, %c3584] : memref<16x3840xbf16, #tpu.memory_space<vmem>>, vector<16x256xbf16>
    tpu.vector_store %arg13[%c0_1, %c3584], %0 {strides = array<i32>} : memref<16x3840xbf16, #tpu.memory_space<vmem>>, vector<16x256xbf16>,
    %c0_2 = arith.constant 0 : index
    %c0_3 = arith.constant 0 : index
    %c0_4 = arith.constant 0 : index
    %3 = vector.load %arg1[%c0_2, %c0_3, %c0_4] : memref<1x8x3840xbf16, #tpu.memory_space<vmem>>, vector<1x8x3328xbf16>
    %4 = vector.shape_cast %3 : vector<1x8x3328xbf16> to vector<8x3328xbf16>
    %c0_5 = arith.constant 0 : index
    %c0_6 = arith.constant 0 : index
    %c256 = arith.constant 256 : index
    %5 = vector.load %arg1[%c0_5, %c0_6, %c256] : memref<1x8x3840xbf16, #tpu.memory_space<vmem>>, vector<1x8x3328xbf16>
    %6 = vector.shape_cast %5 : vector<1x8x3328xbf16> to vector<8x3328xbf16>
    %c0_7 = arith.constant 0 : index
    %c0_8 = arith.constant 0 : index
    %c512 = arith.constant 512 : index
    %7 = vector.load %arg1[%c0_7, %c0_8, %c512] : memref<1x8x3840xbf16, #tpu.memory_space<vmem>>, vector<1x8x3328xbf16>
    %8 = vector.shape_cast %7 : vector<1x8x3328xbf16> to vector<8x3328xbf16>
    %9 = tpu.concatenate %4, %6, %8 in 0 : vector<8x3328xbf16>, vector<8x3328xbf16>, vector<8x3328xbf16> -> vector<24x3328xbf16>
    %c0_9 = arith.constant 0 : index
    %c0_10 = arith.constant 0 : index
    %10 = vector.load %arg2[%c0_9, %c0_10] : memref<16x24xbf16, #tpu.memory_space<vmem>>, vector<16x24xbf16>
    %cst_11 = arith.constant dense<0.000000e+00> : vector<16x3328xf32>
    %11 = tpu.matmul %10, %9, %cst_11 {dimension_numbers = #tpu.dot_dimension_numbers<[1], [0], [0], [1], [0, 0, 1, 1], [], []>} : vector<16x24xbf16>, vector<24x3328xbf16>, vector<16x3328xf32> -> vector<16x3328xf32>
    %c0_12 = arith.constant 0 : index
    %c0_13 = arith.constant 0 : index
    %12 = vector.load %arg3[%c0_12, %c0_13] : memref<16x1xf32, #tpu.memory_space<vmem>>, vector<16x1xf32>
    %13 = vector.broadcast %12 : vector<16x1xf32> to vector<16x3328xf32>
    %14 = arith.addf %11, %13 : vector<16x3328xf32>
    %cst_14 = arith.constant 0.000000e+00 : f32
    %15 = vector.broadcast %cst_14 : f32 to vector<16x3328xf32>
    %16 = arith.maximumf %14, %15 : vector<16x3328xf32>
    %17 = arith.truncf %16 : vector<16x3328xf32> to vector<16x3328xbf16>
    %c0_15 = arith.constant 0 : index
    %c256_16 = arith.constant 256 : index
    %18 = vector.load %arg13[%c0_15, %c256_16] : memref<16x3840xbf16, #tpu.memory_space<vmem>>, vector<16x3328xbf16>
    tpu.vector_store %arg13[%c0_15, %c256_16], %17 {strides = array<i32>} : memref<16x3840xbf16, #tpu.memory_space<vmem>>, vector<16x3328xbf16>,
    %c0_17 = arith.constant 0 : index
    %c0_18 = arith.constant 0 : index
    %19 = vector.load %arg13[%c0_17, %c0_18] : memref<16x3840xbf16, #tpu.memory_space<vmem>>, vector<16x3328xbf16>
    %c0_19 = arith.constant 0 : index
    %c256_20 = arith.constant 256 : index
    %20 = vector.load %arg13[%c0_19, %c256_20] : memref<16x3840xbf16, #tpu.memory_space<vmem>>, vector<16x3328xbf16>
    %c0_21 = arith.constant 0 : index
    %c512_22 = arith.constant 512 : index
    %21 = vector.load %arg13[%c0_21, %c512_22] : memref<16x3840xbf16, #tpu.memory_space<vmem>>, vector<16x3328xbf16>
    %22 = tpu.concatenate %19, %20, %21 in 0 : vector<16x3328xbf16>, vector<16x3328xbf16>, vector<16x3328xbf16> -> vector<48x3328xbf16>
    %c0_23 = arith.constant 0 : index
    %c0_24 = arith.constant 0 : index
    %23 = vector.load %arg4[%c0_23, %c0_24] : memref<16x48xbf16, #tpu.memory_space<vmem>>, vector<16x48xbf16>
    %cst_25 = arith.constant dense<0.000000e+00> : vector<16x3328xf32>
    %24 = tpu.matmul %23, %22, %cst_25 {dimension_numbers = #tpu.dot_dimension_numbers<[1], [0], [0], [1], [0, 0, 1, 1], [], []>} : vector<16x48xbf16>, vector<48x3328xbf16>, vector<16x3328xf32> -> vector<16x3328xf32>
    %c0_26 = arith.constant 0 : index
    %c0_27 = arith.constant 0 : index
    %25 = vector.load %arg5[%c0_26, %c0_27] : memref<16x1xf32, #tpu.memory_space<vmem>>, vector<16x1xf32>
    %26 = vector.broadcast %25 : vector<16x1xf32> to vector<16x3328xf32>
    %27 = arith.addf %24, %26 : vector<16x3328xf32>
    %cst_28 = arith.constant 0.000000e+00 : f32
    %28 = vector.broadcast %cst_28 : f32 to vector<16x3328xf32>
    %29 = arith.maximumf %27, %28 : vector<16x3328xf32>
    %30 = arith.truncf %29 : vector<16x3328xf32> to vector<16x3328xbf16>
    %c0_29 = arith.constant 0 : index
    %c256_30 = arith.constant 256 : index
    %31 = vector.load %arg13[%c0_29, %c256_30] : memref<16x3840xbf16, #tpu.memory_space<vmem>>, vector<16x3328xbf16>
    tpu.vector_store %arg13[%c0_29, %c256_30], %30 {strides = array<i32>} : memref<16x3840xbf16, #tpu.memory_space<vmem>>, vector<16x3328xbf16>,
    %c0_31 = arith.constant 0 : index
    %c0_32 = arith.constant 0 : index
    %32 = vector.load %arg13[%c0_31, %c0_32] : memref<16x3840xbf16, #tpu.memory_space<vmem>>, vector<16x3328xbf16>
    %c0_33 = arith.constant 0 : index
    %c256_34 = arith.constant 256 : index
    %33 = vector.load %arg13[%c0_33, %c256_34] : memref<16x3840xbf16, #tpu.memory_space<vmem>>, vector<16x3328xbf16>
    %c0_35 = arith.constant 0 : index
    %c512_36 = arith.constant 512 : index
    %34 = vector.load %arg13[%c0_35, %c512_36] : memref<16x3840xbf16, #tpu.memory_space<vmem>>, vector<16x3328xbf16>
    %35 = tpu.concatenate %32, %33, %34 in 0 : vector<16x3328xbf16>, vector<16x3328xbf16>, vector<16x3328xbf16> -> vector<48x3328xbf16>
    %c0_37 = arith.constant 0 : index
    %c0_38 = arith.constant 0 : index
    %36 = vector.load %arg6[%c0_37, %c0_38] : memref<16x48xbf16, #tpu.memory_space<vmem>>, vector<16x48xbf16>
    %cst_39 = arith.constant dense<0.000000e+00> : vector<16x3328xf32>
    %37 = tpu.matmul %36, %35, %cst_39 {dimension_numbers = #tpu.dot_dimension_numbers<[1], [0], [0], [1], [0, 0, 1, 1], [], []>} : vector<16x48xbf16>, vector<48x3328xbf16>, vector<16x3328xf32> -> vector<16x3328xf32>
    %c0_40 = arith.constant 0 : index
    %c0_41 = arith.constant 0 : index
    %38 = vector.load %arg7[%c0_40, %c0_41] : memref<16x1xf32, #tpu.memory_space<vmem>>, vector<16x1xf32>
    %39 = vector.broadcast %38 : vector<16x1xf32> to vector<16x3328xf32>
    %40 = arith.addf %37, %39 : vector<16x3328xf32>
    %cst_42 = arith.constant 0.000000e+00 : f32
    %41 = vector.broadcast %cst_42 : f32 to vector<16x3328xf32>
    %42 = arith.maximumf %40, %41 : vector<16x3328xf32>
    %43 = arith.truncf %42 : vector<16x3328xf32> to vector<16x3328xbf16>
    %c0_43 = arith.constant 0 : index
    %c256_44 = arith.constant 256 : index
    %44 = vector.load %arg13[%c0_43, %c256_44] : memref<16x3840xbf16, #tpu.memory_space<vmem>>, vector<16x3328xbf16>
    tpu.vector_store %arg13[%c0_43, %c256_44], %43 {strides = array<i32>} : memref<16x3840xbf16, #tpu.memory_space<vmem>>, vector<16x3328xbf16>,
    %c0_45 = arith.constant 0 : index
    %c256_46 = arith.constant 256 : index
    %45 = vector.load %arg13[%c0_45, %c256_46] : memref<16x3840xbf16, #tpu.memory_space<vmem>>, vector<16x256xbf16>
    %c0_47 = arith.constant 0 : index
    %c512_48 = arith.constant 512 : index
    %46 = vector.load %arg13[%c0_47, %c512_48] : memref<16x3840xbf16, #tpu.memory_space<vmem>>, vector<16x256xbf16>
    %c0_49 = arith.constant 0 : index
    %c768 = arith.constant 768 : index
    %47 = vector.load %arg13[%c0_49, %c768] : memref<16x3840xbf16, #tpu.memory_space<vmem>>, vector<16x256xbf16>
    %c0_50 = arith.constant 0 : index
    %c1024 = arith.constant 1024 : index
    %48 = vector.load %arg13[%c0_50, %c1024] : memref<16x3840xbf16, #tpu.memory_space<vmem>>, vector<16x256xbf16>
    %c0_51 = arith.constant 0 : index
    %c1280 = arith.constant 1280 : index
    %49 = vector.load %arg13[%c0_51, %c1280] : memref<16x3840xbf16, #tpu.memory_space<vmem>>, vector<16x256xbf16>
    %c0_52 = arith.constant 0 : index
    %c1536 = arith.constant 1536 : index
    %50 = vector.load %arg13[%c0_52, %c1536] : memref<16x3840xbf16, #tpu.memory_space<vmem>>, vector<16x256xbf16>
    %c0_53 = arith.constant 0 : index
    %c1792 = arith.constant 1792 : index
    %51 = vector.load %arg13[%c0_53, %c1792] : memref<16x3840xbf16, #tpu.memory_space<vmem>>, vector<16x256xbf16>
    %c0_54 = arith.constant 0 : index
    %c2048 = arith.constant 2048 : index
    %52 = vector.load %arg13[%c0_54, %c2048] : memref<16x3840xbf16, #tpu.memory_space<vmem>>, vector<16x256xbf16>
    %c0_55 = arith.constant 0 : index
    %c2304 = arith.constant 2304 : index
    %53 = vector.load %arg13[%c0_55, %c2304] : memref<16x3840xbf16, #tpu.memory_space<vmem>>, vector<16x256xbf16>
    %c0_56 = arith.constant 0 : index
    %c2560 = arith.constant 2560 : index
    %54 = vector.load %arg13[%c0_56, %c2560] : memref<16x3840xbf16, #tpu.memory_space<vmem>>, vector<16x256xbf16>
    %c0_57 = arith.constant 0 : index
    %c2816 = arith.constant 2816 : index
    %55 = vector.load %arg13[%c0_57, %c2816] : memref<16x3840xbf16, #tpu.memory_space<vmem>>, vector<16x256xbf16>
    %c0_58 = arith.constant 0 : index
    %c3072 = arith.constant 3072 : index
    %56 = vector.load %arg13[%c0_58, %c3072] : memref<16x3840xbf16, #tpu.memory_space<vmem>>, vector<16x256xbf16>
    %c0_59 = arith.constant 0 : index
    %c3328 = arith.constant 3328 : index
    %57 = vector.load %arg13[%c0_59, %c3328] : memref<16x3840xbf16, #tpu.memory_space<vmem>>, vector<16x256xbf16>
    %58 = tpu.concatenate %45, %46, %47, %48, %49, %50, %51, %52, %53, %54, %55, %56, %57 in 0 : vector<16x256xbf16>, vector<16x256xbf16>, vector<16x256xbf16>, vector<16x256xbf16>, vector<16x256xbf16>, vector<16x256xbf16>, vector<16x256xbf16>, vector<16x256xbf16>, vector<16x256xbf16>, vector<16x256xbf16>, vector<16x256xbf16>, vector<16x256xbf16>, vector<16x256xbf16> -> vector<208x256xbf16>
    %c0_60 = arith.constant 0 : index
    %c0_61 = arith.constant 0 : index
    %59 = vector.load %arg8[%c0_60, %c0_61] : memref<32x208xbf16, #tpu.memory_space<vmem>>, vector<32x208xbf16>
    %cst_62 = arith.constant dense<0.000000e+00> : vector<32x256xf32>
    %60 = tpu.matmul %59, %58, %cst_62 {dimension_numbers = #tpu.dot_dimension_numbers<[1], [0], [0], [1], [0, 0, 1, 1], [], []>} : vector<32x208xbf16>, vector<208x256xbf16>, vector<32x256xf32> -> vector<32x256xf32>
    %c0_63 = arith.constant 0 : index
    %c0_64 = arith.constant 0 : index
    %61 = vector.load %arg9[%c0_63, %c0_64] : memref<32x1xf32, #tpu.memory_space<vmem>>, vector<32x1xf32>
    %62 = vector.broadcast %61 : vector<32x1xf32> to vector<32x256xf32>
    %63 = arith.addf %60, %62 : vector<32x256xf32>
    %cst_65 = arith.constant 0.000000e+00 : f32
    %64 = vector.broadcast %cst_65 : f32 to vector<32x256xf32>
    %65 = arith.maximumf %63, %64 : vector<32x256xf32>
    %c0_66 = arith.constant 0 : index
    %c0_67 = arith.constant 0 : index
    %66 = vector.load %arg10[%c0_66, %c0_67] : memref<2x32xbf16, #tpu.memory_space<vmem>>, vector<2x32xbf16>
    %67 = arith.truncf %65 : vector<32x256xf32> to vector<32x256xbf16>
    %cst_68 = arith.constant dense<0.000000e+00> : vector<2x256xf32>
    %68 = tpu.matmul %66, %67, %cst_68 {dimension_numbers = #tpu.dot_dimension_numbers<[1], [0], [0], [1], [0, 0, 1, 1], [], []>} : vector<2x32xbf16>, vector<32x256xbf16>, vector<2x256xf32> -> vector<2x256xf32>
    %c0_69 = arith.constant 0 : index
    %c0_70 = arith.constant 0 : index
    %69 = vector.load %arg11[%c0_69, %c0_70] : memref<2x1xf32, #tpu.memory_space<vmem>>, vector<2x1xf32>
    %70 = vector.broadcast %69 : vector<2x1xf32> to vector<2x256xf32>
    %71 = arith.addf %68, %70 : vector<2x256xf32>
    %cst_71 = arith.constant 0.000000e+00 : f32
    %72 = vector.broadcast %cst_71 : f32 to vector<2x256xf32>
    %73 = arith.maximumf %71, %72 : vector<2x256xf32>
    %c0_72 = arith.constant 0 : index
    %c0_73 = arith.constant 0 : index
    %c0_74 = arith.constant 0 : index
    %74 = vector.load %arg12[%c0_72, %c0_73, %c0_74] : memref<1x2x256xf32, #tpu.memory_space<vmem>>, vector<1x2x256xf32>
    %75 = vector.shape_cast %74 : vector<1x2x256xf32> to vector<2x256xf32>
    %76 = vector.shape_cast %73 : vector<2x256xf32> to vector<1x2x256xf32>
    tpu.vector_store %arg12[%c0_72, %c0_73, %c0_74], %76 {strides = array<i32>} : memref<1x2x256xf32, #tpu.memory_space<vmem>>, vector<1x2x256xf32>,
    return
  }
  func.func @transform_0(%arg0: i32) -> (i32, i32, i32) {
    %c0_i32 = arith.constant 0 : i32
    %c0_i32_0 = arith.constant 0 : i32
    %c0_i32_1 = arith.constant 0 : i32
    return %arg0, %c0_i32, %c0_i32_0 : i32, i32, i32
  }
  func.func @transform_1(%arg0: i32) -> (i32, i32) {
    %c0_i32 = arith.constant 0 : i32
    %c0_i32_0 = arith.constant 0 : i32
    %c0_i32_1 = arith.constant 0 : i32
    return %c0_i32, %c0_i32_0 : i32, i32
  }
  func.func @transform_2(%arg0: i32) -> (i32, i32) {
    %c0_i32 = arith.constant 0 : i32
    %c0_i32_0 = arith.constant 0 : i32
    %c0_i32_1 = arith.constant 0 : i32
    return %c0_i32, %c0_i32_0 : i32, i32
  }
  func.func @transform_3(%arg0: i32) -> (i32, i32) {
    %c0_i32 = arith.constant 0 : i32
    %c0_i32_0 = arith.constant 0 : i32
    %c0_i32_1 = arith.constant 0 : i32
    return %c0_i32, %c0_i32_0 : i32, i32
  }
  func.func @transform_4(%arg0: i32) -> (i32, i32) {
    %c0_i32 = arith.constant 0 : i32
    %c0_i32_0 = arith.constant 0 : i32
    %c0_i32_1 = arith.constant 0 : i32
    return %c0_i32, %c0_i32_0 : i32, i32
  }
  func.func @transform_5(%arg0: i32) -> (i32, i32) {
    %c0_i32 = arith.constant 0 : i32
    %c0_i32_0 = arith.constant 0 : i32
    %c0_i32_1 = arith.constant 0 : i32
    return %c0_i32, %c0_i32_0 : i32, i32
  }
  func.func @transform_6(%arg0: i32) -> (i32, i32) {
    %c0_i32 = arith.constant 0 : i32
    %c0_i32_0 = arith.constant 0 : i32
    %c0_i32_1 = arith.constant 0 : i32
    return %c0_i32, %c0_i32_0 : i32, i32
  }
  func.func @transform_7(%arg0: i32) -> (i32, i32) {
    %c0_i32 = arith.constant 0 : i32
    %c0_i32_0 = arith.constant 0 : i32
    %c0_i32_1 = arith.constant 0 : i32
    return %c0_i32, %c0_i32_0 : i32, i32
  }
  func.func @transform_8(%arg0: i32) -> (i32, i32) {
    %c0_i32 = arith.constant 0 : i32
    %c0_i32_0 = arith.constant 0 : i32
    %c0_i32_1 = arith.constant 0 : i32
    return %c0_i32, %c0_i32_0 : i32, i32
  }
  func.func @transform_9(%arg0: i32) -> (i32, i32) {
    %c0_i32 = arith.constant 0 : i32
    %c0_i32_0 = arith.constant 0 : i32
    %c0_i32_1 = arith.constant 0 : i32
    return %c0_i32, %c0_i32_0 : i32, i32
  }
  func.func @transform_10(%arg0: i32) -> (i32, i32) {
    %c0_i32 = arith.constant 0 : i32
    %c0_i32_0 = arith.constant 0 : i32
    %c0_i32_1 = arith.constant 0 : i32
    return %c0_i32, %c0_i32_0 : i32, i32
  }
  func.func @transform_11(%arg0: i32) -> (i32, i32, i32) {
    %c0_i32 = arith.constant 0 : i32
    %c0_i32_0 = arith.constant 0 : i32
    %c0_i32_1 = arith.constant 0 : i32
    return %arg0, %c0_i32, %c0_i32_0 : i32, i32, i32
  }
}

</mosaic_0001>

<bundles_post_ra>
// kernel: tpu_custom_call.1
= control target key start
LH: loop header
LB: loop body
LE: loop exit
PB: predicated region body
PF: predicated region fallthrough
CT: control target
= control target key end

     0   :  { %16 = vsyncpa [#allocation4], 0  ;;  %s5929_s0 = inlined_call_operand.hbm [shape: bf16[2,8,3840], index: 0, kind: input, shape index: {}]   ;;  %s5930_s1 = inlined_call_operand.vmem [shape: bf16[16,24], index: 1, kind: input, shape index: {}]   ;;  %s5931_s2 = inlined_call_operand.vmem [shape: f32[16,1], index: 2, kind: input, shape index: {}]   ;;  %s5932_s3 = inlined_call_operand.vmem [shape: bf16[16,48], index: 3, kind: input, shape index: {}]   ;;  %s5933_s4 = inlined_call_operand.vmem [shape: f32[16,1], index: 4, kind: input, shape index: {}]   ;;  %s5934_s5 = inlined_call_operand.vmem [shape: bf16[16,48], index: 5, kind: input, shape index: {}]   ;;  %s5935_s6 = inlined_call_operand.vmem [shape: f32[16,1], index: 6, kind: input, shape index: {}]   ;;  %s5936_s7 = inlined_call_operand.vmem [shape: bf16[32,208], index: 7, kind: input, shape index: {}]   ;;  %s5937_s8 = inlined_call_operand.vmem [shape: f32[32,1], index: 8, kind: input, shape index: {}]   ;;  %s5938_s9 = inlined_call_operand.vmem [shape: bf16[2,32], index: 9, kind: input, shape index: {}]   ;;  %s5939_s10 = inlined_call_operand.vmem [shape: f32[2,1], index: 10, kind: input, shape index: {}]   ;;  %s5940_s11 = inlined_call_operand.hbm [shape: f32[2,2,256], index: 11, kind: output, shape index: {}]  }
   0x1   :  { %18 = vsyncpa [#allocation4 + $0x1], 0 }
   0x2   :  { %19 = vsyncpa [#allocation5], 0 }
   0x3   :  { %21 = vsyncpa [#allocation5 + $0x1], 0  ;;  %s4994_s17 = smov 0   ;;  %s4996_s18 = smov 0  }
   0x4   :  { %s4998_s19 = smov 0   ;;  %s5000_s20 = smov 0  }
   0x5 LB: > { %5948 = sst [smem:[#allocation9_spill]] %s4917_s17  ;;  %s5015_s21 = sadd.s32 4294967295, %s4929_s20   ;;  %s4929_s20 = sphi %s5000_s20, %s5965_s20   ;;  %s4925_s19 = sphi %s4998_s19, %s5967_s19   ;;  %s4921_s18 = sphi %s4996_s18, %s5969_s18   ;;  %s4917_s17 = sphi %s4994_s17, %s5968_s17  }
   0x6   : > { %5949 = sst [smem:[#allocation10_spill]] %s4925_s19  ;;  %s4249_s22 = sadd.s32 4294967294, %s4929_s20  }
   0x7   : > { %s5019_s23 = sadd.s32 1, %s4929_s20   ;;  %s34_s24 = sadd.s32 1, %s4925_s19 }
   0x8   : > { %5950 = sst [smem:[#allocation11_spill]] %s5019_s23  ;;  %s31_s25 = ssub.s32 %s4929_s20, %s5019_s23 }
   0x9   : > { %p41_p0 = scmp.ne.s32.totalorder %s4925_s19, %s4921_s18  ;;  %p32_p1 = scmp.eq.s32.totalorder %s31_s25, 0 }
   0xa   : > { %p42_p2 = scmp.eq.s32.totalorder %s4929_s20, 0  ;;  %p47_p3 = scmp.ne.s32.totalorder %s4921_s18, %s4917_s17 }
   0xb   : > { %p48_p4 = scmp.eq.s32.totalorder %s5015_s21, 0  ;;  %p281_p7 = scmp.eq.s32.totalorder %s5015_s21, 1 }
   0xc   : > { %s5031_s26 = scalar_select %p32_p1, %s4925_s19, %s34_s24  }
   0xd   : > { %p43_p5 = por %p42_p2, %p41_p0  ;;  %p5033_p6 = por %p48_p4, %p47_p3 }
   0xe   : > { %5951 = sst [smem:[#allocation12_spill]] %s5031_s26  ;;  %p287_p8 = scmp.eq.s32.totalorder %s4249_s22, 1 }
   0xf   : > { %s5952_s27 = scalar_select %p5033_p6, 1, 0 }
  0x10   : > { %p4761_p10 = scmp.lt.s32.totalorder %s4929_s20, 2  ;;  %p5040_p11 = por %p281_p7, %p41_p0 }
  0x11   : > { %p5044_p12 = por %p287_p8, %p47_p3  ;;  %s337_s30 = sand.u32 1, %s4925_s19  }
  0x12   : > { %s5953_s28 = scalar_select %p5040_p11, 1, 0 }
  0x13   : > { %s5954_s29 = scalar_select %p5044_p12, 1, 0 }
  0x14   : > { %s4747_s12 = smul.u32 1920, %s4929_s20  ;;  %p5055_p13 = pnand %p4761_p10, %p43_p5 }
  0x15   : > { %5955 = sst [smem:[#allocation13_spill]] %s5954_s29  ;;  %s4746_s13 = smul.u32 120, %s337_s30 }
  0x16   : > { %s5053_s16 = scalar_lea.hbm %s5929_s0, %s4747_s12  ;;  %s338_s26 = scalar_lea.sflag [#allocation4], %s337_s30 }
  0x17   : > { %s341_s24 = scalar_lea.vmem [#allocation3], %s4746_s13  ;;  %s4837_s19 = scalar_lea.hbm %s5053_s16, 1920 }
  0x18   : > { %s349_s25 = sshll.u32 %s341_s24, 4  ;;  %p4838_p2 = scmp.ne.s32.totalorder %s5053_s16, %s4837_s19  ;;  %s350_s25 = int_to_ptr.vmem [resolvable:$true] %s349_s25 }
  0x19   : > { %p4839_p3 = pneg %p5055_p13  ;;  %s4842_s15 = scalar_lea.hbm %s5929_s0, 3840 }
  0x1a   : > { %p4843_p5 = scmp.lt.s32.totalorder %s5053_s16, %s5929_s0  ;;  %p4844_p8 = scmp.lt.s32.totalorder %s4842_s15, %s4837_s19 }
  0x1b   : > { %p4840_p4 = pnand %p4839_p3, %p4838_p2 }
  0x1c   : > { %p4845_p10 = por %p4844_p8, %p4843_p5 }
  0x1d   : > { %p4841_p7 = pneg %p4840_p4 }
  0x1f   : > { %p4846_p9 = pnand %p4845_p10, %p4841_p7 }
  0x21   : > { %4849 = shalt.err (!%p4846_p9)
}
  0x22   : > { %s4850_s13 = scalar_lea.vmem %s350_s25, 1920  ;;  %s4931_s30 = smov [#allocation3]  }
  0x23   : > { %p4851_p0 = scmp.ne.s32.totalorder %s350_s25, %s4850_s13  ;;  %s4855_s24 = sshll.u32 %s4931_s30, 4  ;;  %s4856_s24 = int_to_ptr.vmem [resolvable:$false] %s4855_s24 }
  0x24   : > { %s4857_s17 = scalar_lea.vmem %s4856_s24, 3840  ;;  %p4858_p2 = scmp.lt.s32.totalorder %s350_s25, %s4856_s24 }
  0x25   : > { %p4853_p1 = pnand %p4851_p0, %p4839_p3  ;;  %p4859_p4 = scmp.lt.s32.totalorder %s4857_s17, %s4850_s13 }
  0x27   : > { %p4854_p12 = pneg %p4853_p1  ;;  %p4860_p11 = por %p4859_p4, %p4858_p2 }
  0x29   : > { %p4861_p6 = pnand %p4860_p11, %p4854_p12 }
  0x2b   : > { %4864 = shalt.err (!%p4861_p6)
}
  0x2c   : > { %4756 = dma.hbm_to_vmem [thread:$0]  (!%p5055_p13), %s5053_s16, 1920, %s350_s25, %s338_s26  }
  0x2d   : > { %p5957_p9 = scmp.lt.s32.totalorder %s4929_s20, 3  ;;  %p5958_p7 = scmp.ge.s32.totalorder %s4929_s20, 1 }
  0x2f   : > { %p355_p5 = pnand %p5958_p7, %p5957_p9 }
  0x30   : > { %s5080_s19 = sand.u32 (!%p355_p5), 1, %s4921_s18   ;;  %p5959_p6 = scmp.ne.s32.totalorder (!%p355_p5), %s5952_s27, 0 }
  0x31   : > { %358 = sbr.rel (%p355_p5) target bundleno = 1252 (0x4e4), region = 64  ;;  %s361_s23 = scalar_lea.sflag (!%p355_p5), [#allocation4], %s5080_s19 }
  0x32   : > { %s4748_s17 = smul.u32 (!%p355_p5), 120, %s5080_s19 }
  0x34   : > { %s5084_s29 = scalar_lea.vmem (!%p355_p5), [#allocation3], %s4748_s17 }
  0x36   : > { %4908 = dma.done.wait (%p5959_p6), %s361_s23, 1920  }
  0x37   : > { %4910 = vsyncadd (%p5959_p6), %s361_s23, 4294965376  ;;  %v4932_v0 = vmov 0   ;;  %v422_v1 = vld [vmem:[%s5084_s29 + $0x10] sm:$0xff]  ;;  %vm570_vm0 = vcmask 1043456   ;;  %v425_v2 = vld [vmem:[%s5084_s29 + $0x28] sm:$0xff]  ;;  %vm670_vm1 = vcmask 195584  }
  0x38   : > { %784 = vmatprep.mubr.bf16.mxu0 %v4932_v0  ;;  %913 = vmatprep.mubr.bf16.mxu1 %v4932_v0  ;;  %v408_v3 = vld [vmem:[%s5084_s29] sm:$0xff]  ;;  %v5097_v4 = vcombine.high %v422_v1, %v422_v1  ;;  %v5099_v5 = vcombine.high %v425_v2, %v425_v2  ;;  %v5101_v6 = vcombine.low %v422_v1, %v422_v1  ;;  %v409_v8 = vld [vmem:[%s5084_s29 + $0x8] sm:$0xff]  ;;  %v411_v9 = vld [vmem:[%s5084_s29 + $0x18] sm:$0xff]  ;;  %vm1888_vm2 = vcmask 392192   ;;  %s4254_s24 = sshll.u32 %s5080_s19, 2  ;;  %s4667_s17 = sshll.u32 %s5015_s21, 6 }
  0x39   : > { %4796 = vset.pattern.permute.xlu0 %v4932_v0  ;;  %4797 = vset.pattern.permute.xlu1 %v4932_v0  ;;  %v5103_v7 = vcombine.low %v425_v2, %v425_v2  ;;  %v412_v10 = vld [vmem:[%s5084_s29 + $0x20] sm:$0xff]  ;;  %v4256_v11 = vcombine.high %v408_v3, %v408_v3  ;;  %v4258_v12 = vcombine.high %v409_v8, %v409_v8  ;;  %v427_v19 = vld [vmem:[%s5084_s29 + $0x38] sm:$0xff]  ;;  %v414_v20 = vld [vmem:[%s5084_s29 + $0x30] sm:$0xff]  ;;  %vm4026_vm3 = vcmask 654336   ;;  %s402_s23 = scalar_lea.vmem [#allocation6], %s4254_s24  ;;  %s4177_s16 = scalar_lea.hbm %s5940_s11, %s4667_s17 }
  0x3a   : > { %v4262_v13 = vcombine.high %v411_v9, %v411_v9  ;;  %v5108_v14 = vcombine.high %v412_v10, %v412_v10  ;;  %4310 = vmatprep.subr.msk.bf16.mxu0 %vm570_vm0, %v5097_v4  ;;  %4316 = vmatprep.subr.msk.bf16.mxu1 %vm570_vm0, %v5099_v5  ;;  %v675_v15 = vsel %vm570_vm0, %v5101_v6, 0  ;;  %v4255_v17 = vcombine.low %v408_v3, %v408_v3  ;;  %v653_v29 = vld [vmem:[%s5931_s2] sm:$0xff]  ;;  %v654_v40 = vld [vmem:[%s5931_s2 + $0x8] sm:$0xff]  ;;  %v431_v50 = vld [vmem:[%s5084_s29 + $0x58] sm:$0xff]  ;;  %s4179_s26 = sshll.u32 %s402_s23, 4  ;;  %s4165_s22 = scalar_lea.sflag [#allocation5], %s5080_s19  ;;  %s4180_s26 = int_to_ptr.vmem [resolvable:$true] %s4179_s26 }
  0x3b   : > { %v693_v16 = vsel %vm570_vm0, %v5103_v7, 0  ;;  %v4257_v18 = vcombine.low %v409_v8, %v409_v8  ;;  %765 = vmatpush1.bf16.msra.mxu0 %v675_v15  ;;  %v577_v21 = vsel %vm570_vm0, %v4256_v11, %v4258_v12  ;;  %v4261_v23 = vcombine.low %v411_v9, %v411_v9  ;;  %v5140_v31 = vld [vmem:[%s5930_s1] sm:$0xff]   ;;  %657 = vperm.xlu0 %4796, %v653_v29   ;;  %v418_v51 = vld [vmem:[%s5084_s29 + $0x50] sm:$0xff]  ;;  %s4865_s25 = scalar_lea.vmem %s4180_s26, 64  ;;  %p5960_p12 = scmp.ne.s32.totalorder %s5953_s28, 0 }
  0x3c   : > { %894 = vmatpush1.bf16.msra.mxu1 %v693_v16  ;;  %v595_v22 = vsel %vm570_vm0, %v4262_v13, %v5108_v14  ;;  %766 = vmatprep.subr.bf16.mxu0 %v577_v21  ;;  %v5124_v25 = vcombine.low %v412_v10, %v412_v10  ;;  %v5126_v26 = vcombine.high %v427_v19, %v427_v19  ;;  %v429_v33 = vld [vmem:[%s5084_s29 + $0x48] sm:$0xff]  ;;  %v416_v38 = vld [vmem:[%s5084_s29 + $0x40] sm:$0xff]  ;;  %v3986_v3 = vld [vmem:[%s5937_s8 + $0x10] sm:$0xff]  ;;  %vm4105_vm4 = vcmask 261120   ;;  %p4866_p11 = scmp.ne.s32.totalorder %s4180_s26, %s4865_s25  ;;  %s4933_s12 = smov [#allocation6]  }
  0x3d   : > { %895 = vmatprep.subr.bf16.mxu1 %v595_v22  ;;  %v573_v24 = vsel %vm570_vm0, %v4255_v17, %v4257_v18  ;;  %v5128_v27 = vcombine.low %v427_v19, %v427_v19  ;;  %v5130_v28 = vcombine.high %v414_v20, %v414_v20  ;;  %v681_v32 = vsel %vm570_vm0, %v4261_v23, 0  ;;  %v3011_v53 = vld [vmem:[%s5935_s6] sm:$0xff]  ;;  %v434_v22 = vld [vmem:[%s5084_s29 + $0x70] sm:$0xff]  ;;  %s4869_s21 = sshll.u32 %s4933_s12, 4  ;;  %s4870_s21 = int_to_ptr.vmem [resolvable:$false] %s4869_s21 }
  0x3e   : > { %v592_v30 = vsel %vm570_vm0, %v4261_v23, %v5124_v25  ;;  %v5149_v35 = vcombine.low %v414_v20, %v414_v20  ;;  %v583_v36 = vsel %vm570_vm0, %v4258_v12, %v5097_v4  ;;  %v580_v39 = vsel %vm570_vm0, %v4257_v18, %v5101_v6  ;;  %v433_v63 = vld [vmem:[%s5084_s29 + $0x68] sm:$0xff]  ;;  %v420_v1 = vld [vmem:[%s5084_s29 + $0x60] sm:$0xff]  ;;  %p4867_p13 = pnand %p4866_p11, %p5960_p12  ;;  %s4871_s14 = scalar_lea.vmem %s4870_s21, 128 }
  0x3f   : > { %767 = vmatpush1.bf16.msra.mxu0 %v573_v24  ;;  %v705_v34 = vsel %vm570_vm0, %v5128_v27, 0  ;;  %v607_v37 = vsel %vm570_vm0, %v5099_v5, %v5130_v28  ;;  %v5169_v42 = vcombine.high %v429_v33, %v429_v33  ;;  %v5171_v43 = vcombine.low %v429_v33, %v429_v33  ;;  %662 = vperm.xlu0 %4796, %v654_v40   ;;  %v4099_v18 = vld [vmem:[%s5939_s10] sm:$0x3]  ;;  %v3985_v33 = vld [vmem:[%s5937_s8 + $0x8] sm:$0xff]  ;;  %p4872_p1 = scmp.lt.s32.totalorder %s4180_s26, %s4870_s21  ;;  %p4873_p3 = scmp.lt.s32.totalorder %s4871_s14, %s4865_s25 }
  0x40   : > { %896 = vmatpush1.bf16.msra.mxu1 %v592_v30  ;;  %4312 = vmatprep.subr.msk.bf16.mxu0 %vm570_vm0, %v4262_v13  ;;  %v604_v41 = vsel %vm570_vm0, %v5103_v7, %v5149_v35  ;;  %v5175_v44 = vcombine.high %v416_v38, %v416_v38  ;;  %v687_v45 = vsel %vm570_vm0, %v5124_v25, 0  ;;  %v5185_v47 = vcombine.low %v416_v38, %v416_v38  ;;  %v1871_v29 = vld [vmem:[%s5933_s4] sm:$0xff]  ;;  %v1872_v30 = vld [vmem:[%s5933_s4 + $0x8] sm:$0xff]  ;;  %p4868_p0 = pneg %p4867_p13 }
  0x41   : > { %4320 = vmatprep.subr.msk.bf16.mxu1 %vm570_vm0, %v5126_v26  ;;  %v717_v46 = vsel %vm570_vm0, %v5171_v43, 0  ;;  %v589_v48 = vsel %vm570_vm0, %v5097_v4, %v4262_v13  ;;  %v586_v52 = vsel %vm570_vm0, %v5101_v6, %v4261_v23  ;;  %v5206_v55 = vcombine.high %v431_v50, %v431_v50  ;;  %v3984_v13 = vld [vmem:[%s5937_s8] sm:$0xff]  ;;  %1875 = vperm.xlu1 %4797, %v1871_v29   ;;  %p4874_p8 = por %p4873_p3, %p4872_p1 }
  0x42   : > { %4311 = vmatmul.mubr.msk.bf16.vlgmr.msra.gmra.mxu0 %vm670_vm1, %v5140_v31  ;;  %v619_v49 = vsel %vm570_vm0, %v5126_v26, %v5175_v44  ;;  %v616_v54 = vsel %vm570_vm0, %v5128_v27, %v5185_v47  ;;  %v5208_v56 = vcombine.low %v431_v50, %v431_v50  ;;  %v5212_v57 = vcombine.high %v418_v51, %v418_v51 }
  0x43   : > { %4317 = vmatmul.mubr.msk.bf16.vlgmr.msra.gmra.mxu1 %vm670_vm1, %v5140_v31  ;;  %808 = vmatpush1.bf16.msra.mxu0 %v681_v32  ;;  %v699_v58 = vsel %vm570_vm0, %v5149_v35, 0  ;;  %v5222_v60 = vcombine.low %v418_v51, %v418_v51  ;;  %v601_v61 = vsel %vm570_vm0, %v5108_v14, %v5099_v5  ;;  %v598_v2 = vsel %vm570_vm0, %v5124_v25, %v5103_v7  ;;  %v3012_v32 = vld [vmem:[%s5935_s6 + $0x8] sm:$0xff]  ;;  %p4875_p10 = pnand %p4874_p8, %p4868_p0 }
  0x44   : > { %980 = vmatpush1.bf16.msra.mxu1 %v705_v34  ;;  %809 = vmatprep.subr.bf16.mxu0 %v583_v36  ;;  %v729_v59 = vsel %vm570_vm0, %v5208_v56, 0  ;;  %v631_v62 = vsel %vm570_vm0, %v5169_v42, %v5212_v57  ;;  %v4306_v5 = vcombine.high %v433_v63, %v433_v63  ;;  %v4305_v6 = vcombine.low %v433_v63, %v433_v63 }
  0x45   : > { %981 = vmatprep.subr.bf16.mxu1 %v607_v37  ;;  %827 = vmatprep.mubr.bf16.mxu0 %v4932_v0  ;;  %v628_v4 = vsel %vm570_vm0, %v5171_v43, %v5222_v60  ;;  %v4280_v8 = vcombine.high %v420_v1, %v420_v1  ;;  %v711_v7 = vsel %vm570_vm0, %v5185_v47, 0  ;;  %v4279_v10 = vcombine.low %v420_v1, %v420_v1 }
  0x46   : > { %999 = vmatprep.mubr.bf16.mxu1 %v4932_v0  ;;  %3015 = vperm.xlu0 %4796, %v3011_v53   ;;  %v741_v9 = vsel %vm570_vm0, %v4305_v6, 0  ;;  %v613_v11 = vsel %vm570_vm0, %v5130_v28, %v5126_v26  ;;  %v723_v16 = vsel %vm570_vm0, %v5222_v60, 0  ;;  %v625_v17 = vsel %vm570_vm0, %v5175_v44, %v5169_v42 }
  0x47   : > { %810 = vmatpush1.bf16.msra.mxu0 %v580_v39  ;;  %v643_v12 = vsel %vm570_vm0, %v5206_v55, %v4280_v8  ;;  %v640_v15 = vsel %vm570_vm0, %v5208_v56, %v4279_v10  ;;  %v622_v19 = vsel %vm570_vm0, %v5185_v47, %v5171_v43  ;;  %v735_v20 = vsel %vm570_vm0, %v4279_v10, 0  ;;  %1880 = vperm.xlu1 %4797, %v1872_v30  }
  0x48   : > { %982 = vmatpush1.bf16.msra.mxu1 %v604_v41  ;;  %4314 = vmatprep.subr.msk.bf16.mxu0 %vm570_vm0, %v5108_v14  ;;  %v610_v14 = vsel %vm570_vm0, %v5149_v35, %v5128_v27  ;;  %v637_v21 = vsel %vm570_vm0, %v5212_v57, %v5206_v55  ;;  %v634_v23 = vsel %vm570_vm0, %v5222_v60, %v5208_v56 }
  0x49   : > { %4324 = vmatprep.subr.msk.bf16.mxu1 %vm570_vm0, %v5169_v42  ;;  %v4308_v24 = vcombine.high %v434_v22, %v434_v22  ;;  %v4307_v25 = vcombine.low %v434_v22, %v434_v22  ;;  %v649_v27 = vsel %vm570_vm0, %v4280_v8, %v4306_v5  ;;  %v5370_v29 = vcombine.high %v4932_v0, %v4932_v0 }
  0x4a   : > { %4313 = vmatmul.mubr.msk.bf16.vlgmr.msra.gmra.mxu0 %vm670_vm1, %v5140_v31  ;;  %4000 = vperm.xlu0 %4796, %v3986_v3  }
  0x4b   : > { %4321 = vmatmul.mubr.msk.bf16.vlgmr.msra.gmra.mxu1 %vm670_vm1, %v5140_v31  ;;  %851 = vmatpush1.bf16.msra.mxu0 %v687_v45  ;;  %v747_v26 = vsel %vm570_vm0, %v4307_v25, 0 }
  0x4c   : > { %1066 = vmatpush1.bf16.msra.mxu1 %v717_v46  ;;  %852 = vmatprep.subr.bf16.mxu0 %v589_v48 }
  0x4d   : > { %1067 = vmatprep.subr.bf16.mxu1 %v619_v49  ;;  %870 = vmatprep.mubr.bf16.mxu0 %v4932_v0 }
  0x4e   : > { %1085 = vmatprep.mubr.bf16.mxu1 %v4932_v0  ;;  %3990 = vperm.xlu0 %4796, %v3984_v13  }
  0x4f   : > { %853 = vmatpush1.bf16.msra.mxu0 %v586_v52  ;;  %3020 = vperm.xlu1 %4797, %v3012_v32  }
  0x50   : > { %1068 = vmatpush1.bf16.msra.mxu1 %v616_v54  ;;  %4318 = vmatprep.subr.msk.bf16.mxu0 %vm570_vm0, %v5130_v28  ;;  %v646_v28 = vsel %vm570_vm0, %v4279_v10, %v4305_v6 }
  0x51   : > { %4328 = vmatprep.subr.msk.bf16.mxu1 %vm570_vm0, %v5206_v55 }
  0x52   : > { %4315 = vmatmul.mubr.msk.bf16.vlgmr.msra.gmra.mxu0 %vm670_vm1, %v5140_v31  ;;  %4102 = vperm.xlu0 %4796, %v4099_v18  }
  0x53   : > { %4325 = vmatmul.mubr.msk.bf16.vlgmr.msra.gmra.mxu1 %vm670_vm1, %v5140_v31  ;;  %937 = vmatpush1.bf16.msra.mxu0 %v699_v58 }
  0x54   : > { %1152 = vmatpush1.bf16.msra.mxu1 %v729_v59  ;;  %938 = vmatprep.subr.bf16.mxu0 %v601_v61 }
  0x55   : > { %1153 = vmatprep.subr.bf16.mxu1 %v631_v62  ;;  %956 = vmatprep.mubr.bf16.mxu0 %v4932_v0 }
  0x56   : > { %1171 = vmatprep.mubr.bf16.mxu1 %v4932_v0 }
  0x57   : > { %939 = vmatpush1.bf16.msra.mxu0 %v598_v2 }
  0x58   : > { %1154 = vmatpush1.bf16.msra.mxu1 %v628_v4  ;;  %4322 = vmatprep.subr.msk.bf16.mxu0 %vm570_vm0, %v5175_v44 }
  0x59   : > { %4332 = vmatprep.subr.msk.bf16.mxu1 %vm570_vm0, %v4306_v5 }
  0x5a   : > { %4319 = vmatmul.mubr.msk.bf16.vlgmr.msra.gmra.mxu0 %vm670_vm1, %v5140_v31 }
  0x5b   : > { %4329 = vmatmul.mubr.msk.bf16.vlgmr.msra.gmra.mxu1 %vm670_vm1, %v5140_v31  ;;  %1023 = vmatpush1.bf16.msra.mxu0 %v711_v7 }
  0x5c   : > { %1238 = vmatpush1.bf16.msra.mxu1 %v741_v9  ;;  %1024 = vmatprep.subr.bf16.mxu0 %v613_v11 }
  0x5d   : > { %1239 = vmatprep.subr.bf16.mxu1 %v643_v12  ;;  %1042 = vmatprep.mubr.bf16.mxu0 %v4932_v0 }
  0x5e   : > { %1257 = vmatprep.mubr.bf16.mxu1 %v4932_v0 }
  0x5f   : > { %1025 = vmatpush1.bf16.msra.mxu0 %v610_v14 }
  0x60   : > { %1240 = vmatpush1.bf16.msra.mxu1 %v640_v15  ;;  %4326 = vmatprep.subr.msk.bf16.mxu0 %vm570_vm0, %v5212_v57 }
  0x62   : > { %4323 = vmatmul.mubr.msk.bf16.vlgmr.msra.gmra.mxu0 %vm670_vm1, %v5140_v31 }
  0x63   : > { %4333 = vmatmul.mubr.msk.bf16.vlgmr.msra.gmra.mxu1 %vm670_vm1, %v5140_v31  ;;  %1109 = vmatpush1.bf16.msra.mxu0 %v723_v16 }
  0x64   : > { %1128 = vmatprep.mubr.bf16.mxu0 %v4932_v0  ;;  %1110 = vmatprep.subr.bf16.mxu0 %v625_v17 }
  0x65   : > { %2010 = vmatprep.mubr.bf16.mxu1 %v4932_v0 }
  0x67   : > { %1111 = vmatpush1.bf16.msra.mxu0 %v622_v19 }
  0x68   : > { %4330 = vmatprep.subr.msk.bf16.mxu0 %vm570_vm0, %v4280_v8 }
  0x6a   : > { %4327 = vmatmul.mubr.msk.bf16.vlgmr.msra.gmra.mxu0 %vm670_vm1, %v5140_v31 }
  0x6b   : > { %1195 = vmatpush1.bf16.msra.mxu0 %v735_v20  ;;  %1214 = vmatprep.mubr.bf16.mxu0 %v4932_v0 }
  0x6c   : > { %1196 = vmatprep.subr.bf16.mxu0 %v637_v21 }
  0x6f   : > { %1197 = vmatpush1.bf16.msra.mxu0 %v634_v23 }
  0x70   : > { %4334 = vmatprep.subr.msk.bf16.mxu0 %vm570_vm0, %v4308_v24 }
  0x72   : > { %4331 = vmatmul.mubr.msk.bf16.vlgmr.msra.gmra.mxu0 %vm670_vm1, %v5140_v31 }
  0x73   : > { %1281 = vmatpush1.bf16.msra.mxu0 %v747_v26  ;;  %1300 = vmatprep.mubr.bf16.mxu0 %v4932_v0 }
  0x74   : > { %1282 = vmatprep.subr.bf16.mxu0 %v649_v27 }
  0x77   : > { %1283 = vmatpush1.bf16.msra.mxu0 %v646_v28 }
  0x7a   : > { %4335 = vmatmul.mubr.msk.bf16.vlgmr.msra.gmra.mxu0 %vm670_vm1, %v5140_v31  ;;  %v3987_v31 = vld [vmem:[%s5937_s8 + $0x18] sm:$0xff] }
  0x7b   : > { %1924 = vmatprep.mubr.bf16.mxu0 %v4932_v0  ;;  %4005 = vperm.xlu1 %4797, %v3987_v31  }
  0x7f   : > { %3995 = vperm.xlu1 %4797, %v3985_v33  }
  0xb6   : > { %v5328_v34 = vpop.permute.xlu0 %657 }
  0xba   : > { %v5331_v40 = vpop.permute.xlu0 %662 }
 0x102   : > { %v786_v35 = vpop.f32.mrf.mxu0 }
 0x103   : > { %v915_v36 = vpop.f32.mrf.mxu1  ;;  %v787_v12 = vadd.f32 %v786_v35, %v5328_v34 }
 0x104   : > { %v916_v37 = vadd.f32 %v915_v36, %v5328_v34  ;;  %v788_v38 = vpop.f32.mrf.mxu0 }
 0x105   : > { %v917_v39 = vpop.f32.mrf.mxu1  ;;  %v789_v3 = vadd.f32 %v788_v38, %v5328_v34  ;;  %v1311_v24 = vmax.f32 %v787_v12, 0.0 }
 0x106   : > { %v918_v41 = vadd.f32 %v917_v39, %v5328_v34  ;;  %v790_v42 = vpop.f32.mrf.mxu0  ;;  %v1317_v45 = vmax.f32 %v916_v37, 0.0 }
 0x107   : > { %v919_v43 = vpop.f32.mrf.mxu1  ;;  %v791_v5 = vadd.f32 %v790_v42, %v5331_v40  ;;  %v1312_v16 = vmax.f32 %v789_v3, 0.0 }
 0x108   : > { %v920_v44 = vadd.f32 %v919_v43, %v5331_v40  ;;  %v792_v46 = vpop.f32.mrf.mxu0  ;;  %v1318_v48 = vmax.f32 %v918_v41, 0.0  ;;  %v5378_v41 = vcombine.low %v4932_v0, %v4932_v0 }
 0x109   : > { %v921_v47 = vpop.f32.mrf.mxu1  ;;  %v793_v60 = vadd.f32 %v792_v46, %v5331_v40  ;;  %v1337_v18 = vmax.f32 %v791_v5, 0.0 }
 0x10a   : > { %v1343_v49 = vmax.f32 %v920_v44, 0.0  ;;  %v922_v50 = vadd.f32 %v921_v47, %v5331_v40  ;;  %v829_v51 = vpop.f32.mrf.mxu0  ;;  %v5391_v47 = vld [vmem:[%s5932_s3] sm:$0xff]  }
 0x10b   : > { %v5336_v52 = vpop.f32.mrf.mxu1  ;;  %v830_v63 = vadd.f32 %v829_v51, %v5328_v34  ;;  %v1338_v9 = vmax.f32 %v793_v60, 0.0  ;;  %v5372_v30 = vpack.c.bf16 %v1337_v18, %v1311_v24 }
 0x10c   : > { %v1344_v53 = vmax.f32 %v922_v50, 0.0  ;;  %v5338_v54 = vpack.c.bf16 %v1343_v49, %v1317_v45  ;;  %v831_v55 = vpop.f32.mrf.mxu0 }
 0x10d   : > { %v1003_v56 = vpop.f32.mrf.mxu1  ;;  %v832_v61 = vadd.f32 %v831_v55, %v5328_v34  ;;  %v1313_v13 = vmax.f32 %v830_v63, 0.0  ;;  %v5358_v21 = vpack.c.bf16 %v1338_v9, %v1312_v16 }
 0x10e   : > { %v5340_v57 = vpack.c.bf16 %v1344_v53, %v1318_v48  ;;  %v833_v58 = vpop.f32.mrf.mxu0  ;;  %v1004_v43 = vadd.f32 %v1003_v56, %v5328_v34  ;;  %v1002_v48 = vadd.f32 %v5336_v52, %v5328_v34 }
 0x10f   : > { %v1005_v59 = vpop.f32.mrf.mxu1  ;;  %v834_v62 = vadd.f32 %v833_v58, %v5331_v40  ;;  %v1314_v10 = vmax.f32 %v832_v61, 0.0 }
 0x110   : > { %1988 = vmatprep.subr.bf16.mxu1 %v5340_v57  ;;  %v835_v1 = vpop.f32.mrf.mxu0  ;;  %v1006_v44 = vadd.f32 %v1005_v59, %v5331_v40  ;;  %v1322_v56 = vmax.f32 %v1004_v43, 0.0  ;;  %v1321_v61 = vmax.f32 %v1002_v48, 0.0 }
 0x111   : > { %v1007_v2 = vpop.f32.mrf.mxu1  ;;  %1989 = vmatpush1.bf16.msra.mxu1 %v5338_v54  ;;  %v836_v4 = vadd.f32 %v835_v1, %v5331_v40  ;;  %v1339_v6 = vmax.f32 %v834_v62, 0.0 }
 0x112   : > { %v872_v8 = vpop.f32.mrf.mxu0  ;;  %v1008_v36 = vadd.f32 %v1007_v2, %v5331_v40  ;;  %v1347_v58 = vmax.f32 %v1006_v44, 0.0 }
 0x113   : > { %v5351_v7 = vpop.f32.mrf.mxu1  ;;  %v1340_v11 = vmax.f32 %v836_v4, 0.0  ;;  %v5356_v19 = vpack.c.bf16 %v1339_v6, %v1313_v13  ;;  %v873_v25 = vadd.f32 %v872_v8, %v5328_v34 }
 0x114   : > { %v874_v14 = vpop.f32.mrf.mxu0  ;;  %v1348_v49 = vmax.f32 %v1008_v36, 0.0  ;;  %v5412_v4 = vpack.c.bf16 %v1347_v58, %v1321_v61 }
 0x115   : > { %v5354_v15 = vpop.f32.mrf.mxu1  ;;  %v4671_v17 = vpack.c.bf16 %v1340_v11, %v1314_v10  ;;  %v875_v22 = vadd.f32 %v874_v14, %v5328_v34  ;;  %v1315_v37 = vmax.f32 %v873_v25, 0.0 }
 0x116   : > { %v876_v20 = vpop.f32.mrf.mxu0  ;;  %v5405_v62 = vpack.c.bf16 %v1348_v49, %v1322_v56  ;;  %v1090_v13 = vadd.f32 %v5354_v15, %v5328_v34 }
 0x117   : > { %v877_v23 = vadd.f32 %v876_v20, %v5331_v40  ;;  %1902 = vmatprep.subr.bf16.mxu0 %v4671_v17  ;;  %v5363_v26 = vpop.f32.mrf.mxu1  ;;  %v1316_v33 = vmax.f32 %v875_v22, 0.0  ;;  %v1088_v20 = vadd.f32 %v5351_v7, %v5328_v34 }
 0x118   : > { %v878_v27 = vpop.f32.mrf.mxu0  ;;  %1903 = vmatpush1.bf16.msra.mxu0 %v5356_v19  ;;  %v1092_v14 = vadd.f32 %v5363_v26, %v5331_v40 }
 0x119   : > { %v879_v28 = vadd.f32 %v878_v27, %v5331_v40  ;;  %1904 = vmatprep.subr.bf16.mxu0 %v5358_v21  ;;  %v1341_v32 = vmax.f32 %v877_v23, 0.0  ;;  %v1093_v38 = vpop.f32.mrf.mxu1 }
 0x11a   : > { %v958_v31 = vpop.f32.mrf.mxu0  ;;  %v1094_v8 = vadd.f32 %v1093_v38, %v5331_v40  ;;  %v1351_v24 = vmax.f32 %v1092_v14, 0.0 }
 0x11b   : > { %v1342_v35 = vmax.f32 %v879_v28, 0.0  ;;  %v5385_v45 = vpack.c.bf16 %v1341_v32, %v1315_v37  ;;  %v5395_v50 = vpop.f32.mrf.mxu1  ;;  %v959_v63 = vadd.f32 %v958_v31, %v5328_v34  ;;  %v1325_v28 = vmax.f32 %v1088_v20, 0.0 }
 0x11c   : > { %v960_v39 = vpop.f32.mrf.mxu0  ;;  %1905 = vmatpush1.bf16.msra.mxu0 %v5372_v30  ;;  %v1352_v18 = vmax.f32 %v1094_v8, 0.0 }
 0x11d   : > { %v5380_v42 = vpack.c.bf16 %v1342_v35, %v1316_v33  ;;  %1906 = vmatprep.subr.bf16.mxu0 %v5370_v29  ;;  %v961_v53 = vadd.f32 %v960_v39, %v5328_v34  ;;  %v5408_v1 = vpop.f32.mrf.mxu1  ;;  %v1319_v10 = vmax.f32 %v959_v63, 0.0  ;;  %v5454_v35 = vpack.c.bf16 %v1351_v24, %v1325_v28 }
 0x11e   : > { %v962_v46 = vpop.f32.mrf.mxu0 }
 0x11f   : > { %1990 = vmatprep.subr.bf16.mxu1 %v5380_v42  ;;  %v963_v52 = vadd.f32 %v962_v46, %v5331_v40  ;;  %v1320_v3 = vmax.f32 %v961_v53, 0.0  ;;  %v1177_v11 = vpop.f32.mrf.mxu1 }
 0x120   : > { %v964_v51 = vpop.f32.mrf.mxu0  ;;  %1907 = vmatpush1.bf16.msra.mxu0 %v5378_v41  ;;  %1991 = vmatpush1.bf16.msra.mxu1 %v5385_v45  ;;  %v1178_v48 = vadd.f32 %v1177_v11, %v5331_v40 }
 0x121   : > { %v965_v55 = vadd.f32 %v964_v51, %v5331_v40  ;;  %1945 = vmatprep.subr.bf16.mxu0 %v5380_v42  ;;  %1992 = vmatprep.subr.bf16.mxu1 %v4671_v17  ;;  %v1345_v5 = vmax.f32 %v963_v52, 0.0  ;;  %v1179_v15 = vpop.f32.mrf.mxu1 }
 0x122   : > { %v1044_v59 = vpop.f32.mrf.mxu0  ;;  %v1180_v38 = vadd.f32 %v1179_v15, %v5331_v40  ;;  %v1355_v52 = vmax.f32 %v1178_v48, 0.0 }
 0x123   : > { %v1346_v60 = vmax.f32 %v965_v55, 0.0  ;;  %4417 = vmatmul.mubr.msk.bf16.vlgmr.msra.gmra.mxu0 %vm1888_vm2, %v5391_v47  ;;  %v5429_v16 = vpack.c.bf16 %v1345_v5, %v1319_v10  ;;  %v5448_v32 = vpop.f32.mrf.mxu1 }
 0x124   : > { %v1046_v2 = vpop.f32.mrf.mxu0  ;;  %1946 = vmatpush1.bf16.msra.mxu0 %v5385_v45  ;;  %1993 = vmatpush1.bf16.msra.mxu1 %v5356_v19  ;;  %v1356_v51 = vmax.f32 %v1180_v38, 0.0 }
 0x125   : > { %1947 = vmatprep.subr.bf16.mxu0 %v4671_v17  ;;  %2074 = vmatprep.subr.bf16.mxu1 %v5405_v62  ;;  %v5417_v9 = vpack.c.bf16 %v1346_v60, %v1320_v3  ;;  %v1047_v23 = vadd.f32 %v1046_v2, %v5328_v34  ;;  %v1261_v44 = vpop.f32.mrf.mxu1 }
 0x126   : > { %v1048_v6 = vpop.f32.mrf.mxu0  ;;  %1967 = vmatprep.mubr.bf16.mxu0 %v4932_v0 }
 0x127   : > { %4419 = vmatmul.mubr.msk.bf16.vlgmr.msra.gmra.mxu1 %vm1888_vm2, %v5391_v47  ;;  %v1049_v25 = vadd.f32 %v1048_v6, %v5331_v40  ;;  %v1324_v33 = vmax.f32 %v1047_v23, 0.0  ;;  %v1263_v55 = vpop.f32.mrf.mxu1 }
 0x128   : > { %v1050_v12 = vpop.f32.mrf.mxu0  ;;  %1948 = vmatpush1.bf16.msra.mxu0 %v5356_v19  ;;  %2075 = vmatpush1.bf16.msra.mxu1 %v5412_v4 }
 0x129   : > { %1949 = vmatprep.subr.bf16.mxu0 %v5358_v21  ;;  %2076 = vmatprep.subr.bf16.mxu1 %v5417_v9  ;;  %v1051_v19 = vadd.f32 %v1050_v12, %v5331_v40  ;;  %v1326_v21 = vmax.f32 %v1090_v13, 0.0  ;;  %v1349_v36 = vmax.f32 %v1049_v25, 0.0  ;;  %v1264_v12 = vadd.f32 %v1263_v55, %v5331_v40 }
 0x12a   : > { %v5431_v17 = vpop.f32.mrf.mxu0  ;;  %2096 = vmatprep.mubr.bf16.mxu1 %v4932_v0 }
 0x12b   : > { %v5443_v27 = vpack.c.bf16 %v1352_v18, %v1326_v21  ;;  %v1350_v7 = vmax.f32 %v1051_v19, 0.0  ;;  %v1131_v63 = vadd.f32 %v5431_v17, %v5328_v34  ;;  %v1359_v20 = vmax.f32 %v1264_v12, 0.0 }
 0x12c   : > { %v1132_v22 = vpop.f32.mrf.mxu0  ;;  %1950 = vmatpush1.bf16.msra.mxu0 %v5372_v30  ;;  %2077 = vmatpush1.bf16.msra.mxu1 %v5429_v16  ;;  %v1045_v30 = vadd.f32 %v1044_v59, %v5328_v34 }
 0x12d   : > { %2031 = vmatprep.subr.bf16.mxu0 %v5417_v9  ;;  %2078 = vmatprep.subr.bf16.mxu1 %v5340_v57  ;;  %v5460_v39 = vpack.c.bf16 %v1350_v7, %v1324_v33  ;;  %v1133_v58 = vadd.f32 %v1132_v22, %v5328_v34  ;;  %v1327_v10 = vmax.f32 %v1131_v63, 0.0 }
 0x12e   : > { %v1134_v26 = vpop.f32.mrf.mxu0  ;;  %v1323_v43 = vmax.f32 %v1045_v30, 0.0 }
 0x12f   : > { %4418 = vmatmul.mubr.msk.bf16.vlgmr.msra.gmra.mxu0 %vm1888_vm2, %v5391_v47  ;;  %v1135_v59 = vadd.f32 %v1134_v26, %v5331_v40  ;;  %v1328_v2 = vmax.f32 %v1133_v58, 0.0 }
 0x130   : > { %v1136_v31 = vpop.f32.mrf.mxu0  ;;  %2032 = vmatpush1.bf16.msra.mxu0 %v5429_v16  ;;  %2079 = vmatpush1.bf16.msra.mxu1 %v5338_v54  ;;  %v5471_v49 = vpack.c.bf16 %v1349_v36, %v1323_v43 }
 0x131   : > { %2033 = vmatprep.subr.bf16.mxu0 %v5340_v57  ;;  %2160 = vmatprep.subr.bf16.mxu1 %v5443_v27  ;;  %v1176_v57 = vadd.f32 %v5408_v1, %v5328_v34  ;;  %v1137_v53 = vadd.f32 %v1136_v31, %v5331_v40  ;;  %v1353_v5 = vmax.f32 %v1135_v59, 0.0 }
 0x132   : > { %v5456_v37 = vpop.f32.mrf.mxu0  ;;  %2053 = vmatprep.mubr.bf16.mxu0 %v4932_v0 }
 0x133   : > { %4421 = vmatmul.mubr.msk.bf16.vlgmr.msra.gmra.mxu1 %vm1888_vm2, %v5391_v47  ;;  %v1354_v61 = vmax.f32 %v1137_v53, 0.0  ;;  %v5507_v13 = vpack.c.bf16 %v1353_v5, %v1327_v10 }
 0x134   : > { %v1218_v46 = vpop.f32.mrf.mxu0  ;;  %2034 = vmatpush1.bf16.msra.mxu0 %v5338_v54  ;;  %2161 = vmatpush1.bf16.msra.mxu1 %v5454_v35  ;;  %v1174_v54 = vadd.f32 %v5395_v50, %v5328_v34 }
 0x135   : > { %2035 = vmatprep.subr.bf16.mxu0 %v5380_v42  ;;  %2162 = vmatprep.subr.bf16.mxu1 %v5460_v39  ;;  %v1330_v42 = vmax.f32 %v1176_v57, 0.0  ;;  %v5497_v8 = vpack.c.bf16 %v1354_v61, %v1328_v2  ;;  %v1219_v19 = vadd.f32 %v1218_v46, %v5328_v34  ;;  %v5560_v46 = vpop.permute.xlu1 %1875 }
 0x136   : > { %2182 = vmatprep.mubr.bf16.mxu1 %v4932_v0  ;;  %v1220_v56 = vpop.f32.mrf.mxu0  ;;  %v1329_v50 = vmax.f32 %v1174_v54, 0.0 }
 0x137   : > { %v5483_v60 = vpack.c.bf16 %v1356_v51, %v1330_v42  ;;  %v1221_v15 = vadd.f32 %v1220_v56, %v5331_v40  ;;  %v1332_v25 = vmax.f32 %v1219_v19, 0.0 }
 0x138   : > { %2036 = vmatpush1.bf16.msra.mxu0 %v5385_v45  ;;  %2163 = vmatpush1.bf16.msra.mxu1 %v5471_v49  ;;  %v1265_v45 = vpop.f32.mrf.mxu1  ;;  %v1222_v1 = vpop.f32.mrf.mxu0  ;;  %v5493_v3 = vpack.c.bf16 %v1355_v52, %v1329_v50 }
 0x139   : > { %2117 = vmatprep.subr.bf16.mxu0 %v5460_v39  ;;  %2164 = vmatprep.subr.bf16.mxu1 %v5405_v62  ;;  %v1266_v6 = vadd.f32 %v1265_v45, %v5331_v40  ;;  %v1223_v17 = vadd.f32 %v1222_v1, %v5331_v40  ;;  %v1357_v7 = vmax.f32 %v1221_v15, 0.0  ;;  %v5564_v55 = vpop.permute.xlu1 %1880 }
 0x13a   : > { %v1302_v11 = vpop.f32.mrf.mxu0 }
 0x13b   : > { %4420 = vmatmul.mubr.msk.bf16.vlgmr.msra.gmra.mxu0 %vm1888_vm2, %v5391_v47  ;;  %v1360_v14 = vmax.f32 %v1266_v6, 0.0  ;;  %v1358_v21 = vmax.f32 %v1223_v17, 0.0 }
 0x13c   : > { %2118 = vmatpush1.bf16.msra.mxu0 %v5471_v49  ;;  %2165 = vmatpush1.bf16.msra.mxu1 %v5412_v4  ;;  %v1304_v18 = vpop.f32.mrf.mxu0 }
 0x13d   : > { %2119 = vmatprep.subr.bf16.mxu0 %v5405_v62  ;;  %2246 = vmatprep.subr.bf16.mxu1 %v5483_v60  ;;  %v1262_v62 = vadd.f32 %v1261_v44, %v5328_v34  ;;  %v4689_v28 = vpack.c.bf16 %v1358_v21, %v1332_v25  ;;  %v1305_v33 = vadd.f32 %v1304_v18, %v5328_v34 }
 0x13e   : > { %2139 = vmatprep.mubr.bf16.mxu0 %v4932_v0  ;;  %v1306_v24 = vpop.f32.mrf.mxu0 }
 0x13f   : > { %4423 = vmatmul.mubr.msk.bf16.vlgmr.msra.gmra.mxu1 %vm1888_vm2, %v5391_v47  ;;  %v1307_v36 = vadd.f32 %v1306_v24, %v5331_v40  ;;  %v1336_v38 = vmax.f32 %v1305_v33, 0.0 }
 0x140   : > { %2120 = vmatpush1.bf16.msra.mxu0 %v5412_v4  ;;  %2247 = vmatpush1.bf16.msra.mxu1 %v5493_v3  ;;  %v1260_v4 = vadd.f32 %v5448_v32, %v5328_v34  ;;  %v1308_v32 = vpop.f32.mrf.mxu0 }
 0x141   : > { %2121 = vmatprep.subr.bf16.mxu0 %v5417_v9  ;;  %2248 = vmatprep.subr.bf16.mxu1 %v5497_v8  ;;  %v1334_v9 = vmax.f32 %v1262_v62, 0.0 }
 0x142   : > { %2268 = vmatprep.mubr.bf16.mxu1 %v4932_v0  ;;  %v1333_v23 = vmax.f32 %v1260_v4, 0.0 }
 0x143   : > { %v4691_v22 = vpack.c.bf16 %v1360_v14, %v1334_v9 }
 0x144   : > { %2122 = vmatpush1.bf16.msra.mxu0 %v5429_v16  ;;  %2249 = vmatpush1.bf16.msra.mxu1 %v5507_v13  ;;  %v1217_v16 = vadd.f32 %v5456_v37, %v5328_v34  ;;  %v4690_v26 = vpack.c.bf16 %v1359_v20, %v1333_v23  ;;  %v1303_v37 = vadd.f32 %v1302_v11, %v5328_v34 }
 0x145   : > { %2203 = vmatprep.subr.bf16.mxu0 %v5497_v8  ;;  %2250 = vmatprep.subr.bf16.mxu1 %v5443_v27 }
 0x146   : > { %v1331_v30 = vmax.f32 %v1217_v16, 0.0 }
 0x147   : > { %4422 = vmatmul.mubr.msk.bf16.vlgmr.msra.gmra.mxu0 %vm1888_vm2, %v5391_v47 }
 0x148   : > { %2204 = vmatpush1.bf16.msra.mxu0 %v5507_v13  ;;  %2251 = vmatpush1.bf16.msra.mxu1 %v5454_v35  ;;  %v4688_v31 = vpack.c.bf16 %v1357_v7, %v1331_v30 }
 0x149   : > { %2205 = vmatprep.subr.bf16.mxu0 %v5443_v27  ;;  %2332 = vmatprep.subr.bf16.mxu1 %v4691_v22  ;;  %v1309_v27 = vadd.f32 %v1308_v32, %v5331_v40  ;;  %v1335_v40 = vmax.f32 %v1303_v37, 0.0 }
 0x14a   : > { %2225 = vmatprep.mubr.bf16.mxu0 %v4932_v0 }
 0x14b   : > { %4425 = vmatmul.mubr.msk.bf16.vlgmr.msra.gmra.mxu1 %vm1888_vm2, %v5391_v47 }
 0x14c   : > { %2206 = vmatpush1.bf16.msra.mxu0 %v5454_v35  ;;  %2333 = vmatpush1.bf16.msra.mxu1 %v4690_v26  ;;  %v1362_v35 = vmax.f32 %v1309_v27, 0.0 }
 0x14d   : > { %2207 = vmatprep.subr.bf16.mxu0 %v5460_v39  ;;  %2334 = vmatprep.subr.bf16.mxu1 %v4689_v28  ;;  %v1361_v39 = vmax.f32 %v1307_v36, 0.0 }
 0x14e   : > { %2354 = vmatprep.mubr.bf16.mxu1 %v4932_v0  ;;  %v4693_v43 = vpack.c.bf16 %v1362_v35, %v1336_v38 }
 0x14f   : > { %v4692_v34 = vpack.c.bf16 %v1361_v39, %v1335_v40 }
 0x150   : > { %2208 = vmatpush1.bf16.msra.mxu0 %v5471_v49  ;;  %2335 = vmatpush1.bf16.msra.mxu1 %v4688_v31 }
 0x151   : > { %2289 = vmatprep.subr.bf16.mxu0 %v4689_v28  ;;  %2336 = vmatprep.subr.bf16.mxu1 %v5483_v60 }
 0x153   : > { %4424 = vmatmul.mubr.msk.bf16.vlgmr.msra.gmra.mxu0 %vm1888_vm2, %v5391_v47 }
 0x154   : > { %2290 = vmatpush1.bf16.msra.mxu0 %v4688_v31  ;;  %2337 = vmatpush1.bf16.msra.mxu1 %v5493_v3 }
 0x155   : > { %2291 = vmatprep.subr.bf16.mxu0 %v5483_v60  ;;  %2418 = vmatprep.subr.bf16.mxu1 %v5370_v29 }
 0x156   : > { %2311 = vmatprep.mubr.bf16.mxu0 %v4932_v0 }
 0x157   : > { %4427 = vmatmul.mubr.msk.bf16.vlgmr.msra.gmra.mxu1 %vm1888_vm2, %v5391_v47 }
 0x158   : > { %2292 = vmatpush1.bf16.msra.mxu0 %v5493_v3  ;;  %2419 = vmatpush1.bf16.msra.mxu1 %v5378_v41 }
 0x159   : > { %2293 = vmatprep.subr.bf16.mxu0 %v5497_v8  ;;  %2420 = vmatprep.subr.bf16.mxu1 %v4693_v43 }
 0x15a   : > { %2440 = vmatprep.mubr.bf16.mxu1 %v4932_v0 }
 0x15c   : > { %2294 = vmatpush1.bf16.msra.mxu0 %v5507_v13  ;;  %2421 = vmatpush1.bf16.msra.mxu1 %v4692_v34 }
 0x15d   : > { %2375 = vmatprep.subr.bf16.mxu0 %v4693_v43  ;;  %2422 = vmatprep.subr.bf16.mxu1 %v4691_v22 }
 0x15f   : > { %4426 = vmatmul.mubr.msk.bf16.vlgmr.msra.gmra.mxu0 %vm1888_vm2, %v5391_v47 }
 0x160   : > { %2376 = vmatpush1.bf16.msra.mxu0 %v4692_v34  ;;  %2423 = vmatpush1.bf16.msra.mxu1 %v4690_v26 }
 0x161   : > { %2377 = vmatprep.subr.bf16.mxu0 %v4691_v22  ;;  %2397 = vmatprep.mubr.bf16.mxu0 %v4932_v0 }
 0x163   : > { %4429 = vmatmul.mubr.msk.bf16.vlgmr.msra.gmra.mxu1 %vm1888_vm2, %v5391_v47 }
 0x164   : > { %2378 = vmatpush1.bf16.msra.mxu0 %v4690_v26  ;;  %3106 = vmatprep.mubr.bf16.mxu1 %v4932_v0 }
 0x165   : > { %2379 = vmatprep.subr.bf16.mxu0 %v4689_v28 }
 0x168   : > { %2380 = vmatpush1.bf16.msra.mxu0 %v4688_v31 }
 0x16b   : > { %4428 = vmatmul.mubr.msk.bf16.vlgmr.msra.gmra.mxu0 %vm1888_vm2, %v5391_v47 }
 0x16c   : > { %3063 = vmatprep.mubr.bf16.mxu0 %v4932_v0 }
 0x1e3   : > { %v1926_v44 = vpop.f32.mrf.mxu0 }
 0x1e4   : > { %v1927_v15 = vadd.f32 %v1926_v44, %v5560_v46 }
 0x1e5   : > { %v1928_v57 = vpop.f32.mrf.mxu0 }
 0x1e6   : > { %v1929_v13 = vadd.f32 %v1928_v57, %v5560_v46  ;;  %v2451_v27 = vmax.f32 %v1927_v15, 0.0  ;;  %v5601_v57 = vld [vmem:[%s5934_s5] sm:$0xff]  }
 0x1e7   : > { %v2012_v48 = vpop.f32.mrf.mxu1  ;;  %v1930_v49 = vpop.f32.mrf.mxu0 }
 0x1e8   : > { %v2013_v51 = vadd.f32 %v2012_v48, %v5560_v46  ;;  %v1931_v17 = vadd.f32 %v1930_v49, %v5564_v55  ;;  %v2452_v23 = vmax.f32 %v1929_v13, 0.0 }
 0x1e9   : > { %v2014_v53 = vpop.f32.mrf.mxu1  ;;  %v1932_v58 = vpop.f32.mrf.mxu0 }
 0x1ea   : > { %v2015_v54 = vadd.f32 %v2014_v53, %v5560_v46  ;;  %v2455_v47 = vmax.f32 %v2013_v51, 0.0  ;;  %v1933_v6 = vadd.f32 %v1932_v58, %v5564_v55  ;;  %v2477_v26 = vmax.f32 %v1931_v17, 0.0 }
 0x1eb   : > { %v2016_v56 = vpop.f32.mrf.mxu1 }
 0x1ec   : > { %v2017_v42 = vadd.f32 %v2016_v56, %v5564_v55  ;;  %v2456_v59 = vmax.f32 %v2015_v54, 0.0  ;;  %v2478_v9 = vmax.f32 %v1933_v6, 0.0  ;;  %v4694_v37 = vpack.c.bf16 %v2477_v26, %v2451_v27 }
 0x1ed   : > { %v2018_v52 = vpop.f32.mrf.mxu1 }
 0x1ee   : > { %v2481_v60 = vmax.f32 %v2017_v42, 0.0  ;;  %v2019_v61 = vadd.f32 %v2018_v52, %v5564_v55  ;;  %v4695_v32 = vpack.c.bf16 %v2478_v9, %v2452_v23 }
 0x1ef   : > { %v1969_v50 = vpop.f32.mrf.mxu0 }
 0x1f0   : > { %v2482_v45 = vmax.f32 %v2019_v61, 0.0  ;;  %v5568_v63 = vpack.c.bf16 %v2481_v60, %v2455_v47  ;;  %v1970_v11 = vadd.f32 %v1969_v50, %v5560_v46 }
 0x1f1   : > { %v1971_v1 = vpop.f32.mrf.mxu0 }
 0x1f2   : > { %v5570_v2 = vpack.c.bf16 %v2482_v45, %v2456_v59  ;;  %v1972_v8 = vadd.f32 %v1971_v1, %v5560_v46  ;;  %v2453_v22 = vmax.f32 %v1970_v11, 0.0 }
 0x1f3   : > { %v1973_v3 = vpop.f32.mrf.mxu0  ;;  %v2098_v5 = vpop.f32.mrf.mxu1 }
 0x1f4   : > { %v1974_v10 = vadd.f32 %v1973_v3, %v5564_v55  ;;  %3084 = vmatprep.subr.bf16.mxu1 %v5570_v2  ;;  %v2454_v19 = vmax.f32 %v1972_v8, 0.0  ;;  %v2099_v33 = vadd.f32 %v2098_v5, %v5560_v46 }
 0x1f5   : > { %v1975_v62 = vpop.f32.mrf.mxu0  ;;  %v2100_v12 = vpop.f32.mrf.mxu1  ;;  %3085 = vmatpush1.bf16.msra.mxu1 %v5568_v63 }
 0x1f6   : > { %v1976_v14 = vadd.f32 %v1975_v62, %v5564_v55  ;;  %v2479_v4 = vmax.f32 %v1974_v10, 0.0  ;;  %v2101_v24 = vadd.f32 %v2100_v12, %v5560_v46  ;;  %v2459_v48 = vmax.f32 %v2099_v33, 0.0 }
 0x1f7   : > { %v2102_v18 = vpop.f32.mrf.mxu1 }
 0x1f8   : > { %v2480_v20 = vmax.f32 %v1976_v14, 0.0  ;;  %v5586_v7 = vpack.c.bf16 %v2479_v4, %v2453_v22  ;;  %v2103_v28 = vadd.f32 %v2102_v18, %v5564_v55  ;;  %v2460_v35 = vmax.f32 %v2101_v24, 0.0 }
 0x1f9   : > { %v2104_v21 = vpop.f32.mrf.mxu1 }
 0x1fa   : > { %v5582_v16 = vpack.c.bf16 %v2480_v20, %v2454_v19  ;;  %v2105_v25 = vadd.f32 %v2104_v21, %v5564_v55  ;;  %v2485_v38 = vmax.f32 %v2103_v28, 0.0 }
 0x1fb   : > { %v2055_v30 = vpop.f32.mrf.mxu0 }
 0x1fc   : > { %v2486_v31 = vmax.f32 %v2105_v25, 0.0  ;;  %3041 = vmatprep.subr.bf16.mxu0 %v5582_v16  ;;  %3086 = vmatprep.subr.bf16.mxu1 %v5582_v16  ;;  %v2056_v49 = vadd.f32 %v2055_v30, %v5560_v46  ;;  %v5607_v56 = vpack.c.bf16 %v2485_v38, %v2459_v48 }
 0x1fd   : > { %v2057_v36 = vpop.f32.mrf.mxu0  ;;  %3042 = vmatpush1.bf16.msra.mxu0 %v5586_v7  ;;  %3087 = vmatpush1.bf16.msra.mxu1 %v5586_v7 }
 0x1fe   : > { %3043 = vmatprep.subr.bf16.mxu0 %v4695_v32  ;;  %3088 = vmatprep.subr.bf16.mxu1 %v4695_v32  ;;  %v5594_v40 = vpack.c.bf16 %v2486_v31, %v2460_v35  ;;  %v2058_v34 = vadd.f32 %v2057_v36, %v5560_v46  ;;  %v2457_v59 = vmax.f32 %v2056_v49, 0.0 }
 0x1ff   : > { %v2059_v39 = vpop.f32.mrf.mxu0  ;;  %v2184_v43 = vpop.f32.mrf.mxu1 }
 0x200   : > { %v2060_v44 = vadd.f32 %v2059_v39, %v5564_v55  ;;  %v2458_v47 = vmax.f32 %v2058_v34, 0.0  ;;  %v2185_v10 = vadd.f32 %v2184_v43, %v5560_v46 }
 0x201   : > { %v2061_v51 = vpop.f32.mrf.mxu0  ;;  %v2186_v53 = vpop.f32.mrf.mxu1  ;;  %3044 = vmatpush1.bf16.msra.mxu0 %v4694_v37  ;;  %3089 = vmatpush1.bf16.msra.mxu1 %v4694_v37 }
 0x202   : > { %v2062_v54 = vadd.f32 %v2061_v51, %v5564_v55  ;;  %3170 = vmatprep.subr.bf16.mxu1 %v5594_v40  ;;  %3045 = vmatprep.subr.bf16.mxu0 %v5370_v29  ;;  %v2483_v42 = vmax.f32 %v2060_v44, 0.0  ;;  %v2187_v1 = vadd.f32 %v2186_v53, %v5560_v46  ;;  %v2463_v20 = vmax.f32 %v2185_v10, 0.0 }
 0x203   : > { %v2188_v58 = vpop.f32.mrf.mxu1 }
 0x204   : > { %v2484_v52 = vmax.f32 %v2062_v54, 0.0  ;;  %4512 = vmatmul.mubr.msk.bf16.vlgmr.msra.gmra.mxu1 %vm1888_vm2, %v5601_v57  ;;  %v5617_v45 = vpack.c.bf16 %v2483_v42, %v2457_v59  ;;  %v2189_v5 = vadd.f32 %v2188_v58, %v5564_v55  ;;  %v2464_v11 = vmax.f32 %v2187_v1, 0.0 }
 0x205   : > { %v2190_v60 = vpop.f32.mrf.mxu1  ;;  %3046 = vmatpush1.bf16.msra.mxu0 %v5378_v41  ;;  %3171 = vmatpush1.bf16.msra.mxu1 %v5607_v56 }
 0x206   : > { %v5613_v61 = vpack.c.bf16 %v2484_v52, %v2458_v47  ;;  %v2191_v50 = vadd.f32 %v2190_v60, %v5564_v55  ;;  %3192 = vmatprep.mubr.bf16.mxu1 %v4932_v0  ;;  %v2489_v13 = vmax.f32 %v2189_v5, 0.0 }
 0x207   : > { %v2141_v3 = vpop.f32.mrf.mxu0 }
 0x208   : > { %4511 = vmatmul.mubr.msk.bf16.vlgmr.msra.gmra.mxu0 %vm1888_vm2, %v5601_v57  ;;  %3127 = vmatprep.subr.bf16.mxu0 %v5613_v61  ;;  %v2490_v6 = vmax.f32 %v2191_v50, 0.0  ;;  %v2142_v18 = vadd.f32 %v2141_v3, %v5560_v46  ;;  %v5641_v21 = vpack.c.bf16 %v2489_v13, %v2463_v20 }
 0x209   : > { %3172 = vmatprep.subr.bf16.mxu1 %v5613_v61  ;;  %v2143_v8 = vpop.f32.mrf.mxu0  ;;  %3128 = vmatpush1.bf16.msra.mxu0 %v5617_v45 }
 0x20a   : > { %3173 = vmatpush1.bf16.msra.mxu1 %v5617_v45  ;;  %3129 = vmatprep.subr.bf16.mxu0 %v5570_v2  ;;  %v2144_v14 = vadd.f32 %v2143_v8, %v5560_v46  ;;  %v5633_v4 = vpack.c.bf16 %v2490_v6, %v2464_v11  ;;  %v2461_v25 = vmax.f32 %v2142_v18, 0.0 }
 0x20b   : > { %3174 = vmatprep.subr.bf16.mxu1 %v5570_v2  ;;  %v2145_v62 = vpop.f32.mrf.mxu0  ;;  %v2270_v12 = vpop.f32.mrf.mxu1  ;;  %3149 = vmatprep.mubr.bf16.mxu0 %v4932_v0 }
 0x20c   : > { %v2146_v17 = vadd.f32 %v2145_v62, %v5564_v55  ;;  %v2462_v23 = vmax.f32 %v2144_v14, 0.0  ;;  %v2271_v33 = vadd.f32 %v2270_v12, %v5560_v46 }
 0x20d   : > { %v2147_v9 = vpop.f32.mrf.mxu0  ;;  %v2272_v19 = vpop.f32.mrf.mxu1  ;;  %3130 = vmatpush1.bf16.msra.mxu0 %v5568_v63 }
 0x20e   : > { %v2148_v2 = vadd.f32 %v2147_v9, %v5564_v55  ;;  %3175 = vmatpush1.bf16.msra.mxu1 %v5568_v63  ;;  %3131 = vmatprep.subr.bf16.mxu0 %v5582_v16  ;;  %v2487_v15 = vmax.f32 %v2146_v17, 0.0  ;;  %v2273_v30 = vadd.f32 %v2272_v19, %v5560_v46  ;;  %v2467_v51 = vmax.f32 %v2271_v33, 0.0 }
 0x20f   : > { %3256 = vmatprep.subr.bf16.mxu1 %v5633_v4  ;;  %v2274_v22 = vpop.f32.mrf.mxu1 }
 0x210   : > { %v2488_v24 = vmax.f32 %v2148_v2, 0.0  ;;  %v5651_v16 = vpack.c.bf16 %v2487_v15, %v2461_v25  ;;  %v2275_v31 = vadd.f32 %v2274_v22, %v5564_v55  ;;  %v2468_v36 = vmax.f32 %v2273_v30, 0.0 }
 0x211   : > { %4514 = vmatmul.mubr.msk.bf16.vlgmr.msra.gmra.mxu1 %vm1888_vm2, %v5601_v57  ;;  %v2276_v26 = vpop.f32.mrf.mxu1  ;;  %3132 = vmatpush1.bf16.msra.mxu0 %v5586_v7 }
 0x212   : > { %v5646_v28 = vpack.c.bf16 %v2488_v24, %v2462_v23  ;;  %v2277_v63 = vadd.f32 %v2276_v26, %v5564_v55  ;;  %3257 = vmatpush1.bf16.msra.mxu1 %v5641_v21  ;;  %3278 = vmatprep.mubr.bf16.mxu1 %v4932_v0  ;;  %v2493_v38 = vmax.f32 %v2275_v31, 0.0 }
 0x213   : > { %v2227_v32 = vpop.f32.mrf.mxu0 }
 0x214   : > { %4513 = vmatmul.mubr.msk.bf16.vlgmr.msra.gmra.mxu0 %vm1888_vm2, %v5601_v57  ;;  %3213 = vmatprep.subr.bf16.mxu0 %v5646_v28  ;;  %v2494_v7 = vmax.f32 %v2277_v63, 0.0  ;;  %v2228_v44 = vadd.f32 %v2227_v32, %v5560_v46  ;;  %v5675_v42 = vpack.c.bf16 %v2493_v38, %v2467_v51 }
 0x215   : > { %3258 = vmatprep.subr.bf16.mxu1 %v5646_v28  ;;  %v2229_v27 = vpop.f32.mrf.mxu0  ;;  %3214 = vmatpush1.bf16.msra.mxu0 %v5651_v16 }
 0x216   : > { %3259 = vmatpush1.bf16.msra.mxu1 %v5651_v16  ;;  %3215 = vmatprep.subr.bf16.mxu0 %v5594_v40  ;;  %v2230_v39 = vadd.f32 %v2229_v27, %v5560_v46  ;;  %v5667_v34 = vpack.c.bf16 %v2494_v7, %v2468_v36  ;;  %v2465_v52 = vmax.f32 %v2228_v44, 0.0 }
 0x217   : > { %3260 = vmatprep.subr.bf16.mxu1 %v5594_v40  ;;  %v2231_v35 = vpop.f32.mrf.mxu0  ;;  %v2356_v37 = vpop.f32.mrf.mxu1  ;;  %3235 = vmatprep.mubr.bf16.mxu0 %v4932_v0 }
 0x218   : > { %v2232_v43 = vadd.f32 %v2231_v35, %v5564_v55  ;;  %v2466_v58 = vmax.f32 %v2230_v39, 0.0  ;;  %v2357_v6 = vadd.f32 %v2356_v37, %v5560_v46 }
 0x219   : > { %v2233_v48 = vpop.f32.mrf.mxu0  ;;  %v2358_v49 = vpop.f32.mrf.mxu1  ;;  %3216 = vmatpush1.bf16.msra.mxu0 %v5607_v56 }
 0x21a   : > { %v2234_v40 = vadd.f32 %v2233_v48, %v5564_v55  ;;  %3261 = vmatpush1.bf16.msra.mxu1 %v5607_v56  ;;  %3217 = vmatprep.subr.bf16.mxu0 %v5613_v61  ;;  %v2491_v53 = vmax.f32 %v2232_v43, 0.0  ;;  %v2359_v50 = vadd.f32 %v2358_v49, %v5560_v46  ;;  %v2471_v19 = vmax.f32 %v2357_v6, 0.0 }
 0x21b   : > { %3342 = vmatprep.subr.bf16.mxu1 %v5667_v34  ;;  %v2360_v54 = vpop.f32.mrf.mxu1 }
 0x21c   : > { %v2492_v47 = vmax.f32 %v2234_v40, 0.0  ;;  %v5685_v61 = vpack.c.bf16 %v2491_v53, %v2465_v52  ;;  %v2361_v3 = vadd.f32 %v2360_v54, %v5564_v55  ;;  %v2472_v8 = vmax.f32 %v2359_v50, 0.0 }
 0x21d   : > { %4516 = vmatmul.mubr.msk.bf16.vlgmr.msra.gmra.mxu1 %vm1888_vm2, %v5601_v57  ;;  %v2362_v59 = vpop.f32.mrf.mxu1  ;;  %3218 = vmatpush1.bf16.msra.mxu0 %v5617_v45 }
 0x21e   : > { %v5680_v60 = vpack.c.bf16 %v2492_v47, %v2466_v58  ;;  %v2363_v56 = vadd.f32 %v2362_v59, %v5564_v55  ;;  %3343 = vmatpush1.bf16.msra.mxu1 %v5675_v42  ;;  %3364 = vmatprep.mubr.bf16.mxu1 %v4932_v0  ;;  %v2497_v62 = vmax.f32 %v2361_v3, 0.0 }
 0x21f   : > { %v2313_v1 = vpop.f32.mrf.mxu0 }
 0x220   : > { %4515 = vmatmul.mubr.msk.bf16.vlgmr.msra.gmra.mxu0 %vm1888_vm2, %v5601_v57  ;;  %3299 = vmatprep.subr.bf16.mxu0 %v5680_v60  ;;  %v2498_v45 = vmax.f32 %v2363_v56, 0.0  ;;  %v2314_v17 = vadd.f32 %v2313_v1, %v5560_v46  ;;  %v4714_v15 = vpack.c.bf16 %v2497_v62, %v2471_v19  ;;  %v5784_v19 = vpop.permute.xlu1 %3020 }
 0x221   : > { %3344 = vmatprep.subr.bf16.mxu1 %v5680_v60  ;;  %v2315_v5 = vpop.f32.mrf.mxu0  ;;  %3300 = vmatpush1.bf16.msra.mxu0 %v5685_v61 }
 0x222   : > { %3345 = vmatpush1.bf16.msra.mxu1 %v5685_v61  ;;  %3301 = vmatprep.subr.bf16.mxu0 %v5633_v4  ;;  %v2316_v12 = vadd.f32 %v2315_v5, %v5560_v46  ;;  %v5701_v14 = vpack.c.bf16 %v2498_v45, %v2472_v8  ;;  %v2469_v24 = vmax.f32 %v2314_v17, 0.0 }
 0x223   : > { %3346 = vmatprep.subr.bf16.mxu1 %v5633_v4  ;;  %v2317_v10 = vpop.f32.mrf.mxu0  ;;  %v2442_v11 = vpop.f32.mrf.mxu1  ;;  %3321 = vmatprep.mubr.bf16.mxu0 %v4932_v0 }
 0x224   : > { %v2318_v13 = vadd.f32 %v2317_v10, %v5564_v55  ;;  %v2470_v22 = vmax.f32 %v2316_v12, 0.0 }
 0x225   : > { %v2319_v18 = vpop.f32.mrf.mxu0  ;;  %v2444_v9 = vpop.f32.mrf.mxu1  ;;  %3302 = vmatpush1.bf16.msra.mxu0 %v5641_v21 }
 0x226   : > { %v2320_v4 = vadd.f32 %v2319_v18, %v5564_v55  ;;  %3347 = vmatpush1.bf16.msra.mxu1 %v5641_v21  ;;  %3303 = vmatprep.subr.bf16.mxu0 %v5646_v28  ;;  %v2495_v20 = vmax.f32 %v2318_v13, 0.0  ;;  %v2445_v28 = vadd.f32 %v2444_v9, %v5560_v46  ;;  %v5782_v18 = vpop.permute.xlu0 %3015 }
 0x227   : > { %3428 = vmatprep.subr.bf16.mxu1 %v5701_v14  ;;  %v2446_v2 = vpop.f32.mrf.mxu1 }
 0x228   : > { %v2496_v23 = vmax.f32 %v2320_v4, 0.0  ;;  %v4712_v21 = vpack.c.bf16 %v2495_v20, %v2469_v24  ;;  %v2447_v32 = vadd.f32 %v2446_v2, %v5564_v55  ;;  %v2476_v27 = vmax.f32 %v2445_v28, 0.0 }
 0x229   : > { %4518 = vmatmul.mubr.msk.bf16.vlgmr.msra.gmra.mxu1 %vm1888_vm2, %v5601_v57  ;;  %v2448_v25 = vpop.f32.mrf.mxu1  ;;  %3304 = vmatpush1.bf16.msra.mxu0 %v5651_v16  ;;  %v2443_v16 = vadd.f32 %v2442_v11, %v5560_v46 }
 0x22a   : > { %v4713_v26 = vpack.c.bf16 %v2496_v23, %v2470_v22  ;;  %v2449_v63 = vadd.f32 %v2448_v25, %v5564_v55  ;;  %3429 = vmatpush1.bf16.msra.mxu1 %v4714_v15  ;;  %3450 = vmatprep.mubr.bf16.mxu1 %v4932_v0  ;;  %v2501_v36 = vmax.f32 %v2447_v32, 0.0 }
 0x22b   : > { %v2399_v30 = vpop.f32.mrf.mxu0  ;;  %v2475_v44 = vmax.f32 %v2443_v16, 0.0 }
 0x22c   : > { %4517 = vmatmul.mubr.msk.bf16.vlgmr.msra.gmra.mxu0 %vm1888_vm2, %v5601_v57  ;;  %3385 = vmatprep.subr.bf16.mxu0 %v4713_v26  ;;  %v2502_v31 = vmax.f32 %v2449_v63, 0.0  ;;  %v2400_v39 = vadd.f32 %v2399_v30, %v5560_v46 }
 0x22d   : > { %3430 = vmatprep.subr.bf16.mxu1 %v4713_v26  ;;  %v2401_v7 = vpop.f32.mrf.mxu0  ;;  %3386 = vmatpush1.bf16.msra.mxu0 %v4712_v21  ;;  %v4718_v49 = vpack.c.bf16 %v2501_v36, %v2475_v44 }
 0x22e   : > { %3431 = vmatpush1.bf16.msra.mxu1 %v4712_v21  ;;  %3387 = vmatprep.subr.bf16.mxu0 %v5667_v34  ;;  %v2402_v35 = vadd.f32 %v2401_v7, %v5560_v46  ;;  %v4719_v38 = vpack.c.bf16 %v2502_v31, %v2476_v27  ;;  %v2473_v53 = vmax.f32 %v2400_v39, 0.0 }
 0x22f   : > { %3432 = vmatprep.subr.bf16.mxu1 %v5667_v34  ;;  %v2403_v33 = vpop.f32.mrf.mxu0  ;;  %3407 = vmatprep.mubr.bf16.mxu0 %v4932_v0 }
 0x230   : > { %v2404_v37 = vadd.f32 %v2403_v33, %v5564_v55  ;;  %v2474_v51 = vmax.f32 %v2402_v35, 0.0 }
 0x231   : > { %v2405_v43 = vpop.f32.mrf.mxu0  ;;  %3388 = vmatpush1.bf16.msra.mxu0 %v5675_v42 }
 0x232   : > { %v2406_v48 = vadd.f32 %v2405_v43, %v5564_v55  ;;  %3433 = vmatpush1.bf16.msra.mxu1 %v5675_v42  ;;  %3389 = vmatprep.subr.bf16.mxu0 %v5680_v60  ;;  %v2499_v34 = vmax.f32 %v2404_v37, 0.0 }
 0x233   : > { %3514 = vmatprep.subr.bf16.mxu1 %v4719_v38 }
 0x234   : > { %v2500_v40 = vmax.f32 %v2406_v48, 0.0  ;;  %v4716_v55 = vpack.c.bf16 %v2499_v34, %v2473_v53 }
 0x235   : > { %4520 = vmatmul.mubr.msk.bf16.vlgmr.msra.gmra.mxu1 %vm1888_vm2, %v5601_v57  ;;  %3390 = vmatpush1.bf16.msra.mxu0 %v5685_v61 }
 0x236   : > { %v4717_v46 = vpack.c.bf16 %v2500_v40, %v2474_v51  ;;  %3515 = vmatpush1.bf16.msra.mxu1 %v4718_v49  ;;  %3536 = vmatprep.mubr.bf16.mxu1 %v4932_v0 }
 0x238   : > { %4519 = vmatmul.mubr.msk.bf16.vlgmr.msra.gmra.mxu0 %vm1888_vm2, %v5601_v57  ;;  %3471 = vmatprep.subr.bf16.mxu0 %v4717_v46 }
 0x239   : > { %3516 = vmatprep.subr.bf16.mxu1 %v4717_v46  ;;  %3472 = vmatpush1.bf16.msra.mxu0 %v4716_v55 }
 0x23a   : > { %3517 = vmatpush1.bf16.msra.mxu1 %v4716_v55  ;;  %3473 = vmatprep.subr.bf16.mxu0 %v5701_v14 }
 0x23b   : > { %3518 = vmatprep.subr.bf16.mxu1 %v5701_v14  ;;  %3493 = vmatprep.mubr.bf16.mxu0 %v4932_v0 }
 0x23d   : > { %3474 = vmatpush1.bf16.msra.mxu0 %v4714_v15 }
 0x23e   : > { %3519 = vmatpush1.bf16.msra.mxu1 %v4714_v15  ;;  %3475 = vmatprep.subr.bf16.mxu0 %v4713_v26 }
 0x241   : > { %4522 = vmatmul.mubr.msk.bf16.vlgmr.msra.gmra.mxu1 %vm1888_vm2, %v5601_v57  ;;  %3476 = vmatpush1.bf16.msra.mxu0 %v4712_v21 }
 0x242   : > { %3557 = vmatprep.subr.bf16.mxu0 %v5370_v29  ;;  %v4831_v29 = vld [vmem:[%s5936_s7 + $0x4] ss:$8 sps:$4 sm:$0xff]  }
 0x243   : > { %4580 = vmatprep.mubr.msk.bf16.mxu1 %vm4026_vm3, %v4831_v29 }
 0x244   : > { %4521 = vmatmul.mubr.msk.bf16.vlgmr.msra.gmra.mxu0 %vm1888_vm2, %v5601_v57 }
 0x245   : > { %3558 = vmatpush1.bf16.msra.mxu0 %v5378_v41  ;;  %3579 = vmatprep.mubr.bf16.mxu0 %v4932_v0 }
 0x246   : > { %3559 = vmatprep.subr.bf16.mxu0 %v4719_v38 }
 0x249   : > { %3560 = vmatpush1.bf16.msra.mxu0 %v4718_v49 }
 0x24a   : > { %3561 = vmatprep.subr.bf16.mxu0 %v4717_v46 }
 0x24d   : > { %3562 = vmatpush1.bf16.msra.mxu0 %v4716_v55 }
 0x250   : > { %4523 = vmatmul.mubr.msk.bf16.vlgmr.msra.gmra.mxu0 %vm1888_vm2, %v5601_v57 }
 0x251   : > { %4141 = vmatprep.mubr.bf16.mxu0 %v4932_v0 }
 0x2c4   : > { %v5752_v54 = vpop.f32.mrf.mxu1 }
 0x2c6   : > { %v5754_v41 = vpop.f32.mrf.mxu1 }
 0x2c8   : > { %v5756_v42 = vpop.f32.mrf.mxu0  ;;  %v5760_v47 = vpop.f32.mrf.mxu1 }
 0x2ca   : > { %v5758_v58 = vpop.f32.mrf.mxu0  ;;  %v5764_v0 = vpop.f32.mrf.mxu1 }
 0x2cc   : > { %v5762_v57 = vpop.f32.mrf.mxu0 }
 0x2ce   : > { %v5768_v59 = vpop.f32.mrf.mxu0 }
 0x2d1   : > { %v5766_v52 = vpop.f32.mrf.mxu1 }
 0x2d3   : > { %v5770_v60 = vpop.f32.mrf.mxu1 }
 0x2d4   : > { %v5772_v56 = vpop.f32.mrf.mxu0 }
 0x2d5   : > { %v5776_v50 = vpop.f32.mrf.mxu1 }
 0x2d6   : > { %v5774_v61 = vpop.f32.mrf.mxu0 }
 0x2d7   : > { %v3200_v3 = vpop.f32.mrf.mxu1 }
 0x2d8   : > { %v5778_v1 = vpop.f32.mrf.mxu0 }
 0x2da   : > { %v5780_v5 = vpop.f32.mrf.mxu0 }
 0x2dd   : > { %v3280_v45 = vpop.f32.mrf.mxu1 }
 0x2de   : > { %v3281_v34 = vadd.f32 %v3280_v45, %v5782_v18 }
 0x2df   : > { %v3282_v6 = vpop.f32.mrf.mxu1 }
 0x2e0   : > { %v3237_v8 = vpop.f32.mrf.mxu0  ;;  %v3283_v33 = vadd.f32 %v3282_v6, %v5782_v18 }
 0x2e1   : > { %v3284_v11 = vpop.f32.mrf.mxu1 }
 0x2e2   : > { %v3239_v10 = vpop.f32.mrf.mxu0  ;;  %v3285_v36 = vadd.f32 %v3284_v11, %v5784_v19  ;;  %v3601_v40 = vmax.f32 %v3283_v33, 0.0 }
 0x2e3   : > { %v3286_v12 = vpop.f32.mrf.mxu1  ;;  %v3240_v53 = vadd.f32 %v3239_v10, %v5782_v18  ;;  %v3197_v10 = vadd.f32 %v5770_v60, %v5782_v18 }
 0x2e4   : > { %v3241_v62 = vpop.f32.mrf.mxu0  ;;  %v3287_v28 = vadd.f32 %v3286_v12, %v5784_v19  ;;  %v3626_v29 = vmax.f32 %v3285_v36, 0.0  ;;  %v3201_v12 = vadd.f32 %v3200_v3, %v5784_v19 }
 0x2e5   : > { %v3242_v6 = vadd.f32 %v3241_v62, %v5784_v19  ;;  %v3199_v62 = vadd.f32 %v5776_v50, %v5784_v19 }
 0x2e6   : > { %v3243_v14 = vpop.f32.mrf.mxu0  ;;  %v3627_v44 = vmax.f32 %v3287_v28, 0.0  ;;  %v3115_v28 = vadd.f32 %v5764_v0, %v5784_v19  ;;  %v3113_v0 = vadd.f32 %v5760_v47, %v5784_v19 }
 0x2e7   : > { %v3244_v48 = vadd.f32 %v3243_v14, %v5784_v19  ;;  %v3624_v3 = vmax.f32 %v3242_v6, 0.0  ;;  %v3622_v50 = vmax.f32 %v3199_v62, 0.0 }
 0x2e8   : > { %v3618_v47 = vmax.f32 %v3113_v0, 0.0 }
 0x2e9   : > { %v3366_v13 = vpop.f32.mrf.mxu1  ;;  %v3625_v14 = vmax.f32 %v3244_v48, 0.0  ;;  %v3068_v48 = vadd.f32 %v5758_v58, %v5782_v18 }
 0x2ea   : > { %v3367_v22 = vadd.f32 %v3366_v13, %v5782_v18  ;;  %v4731_v13 = vpack.c.bf16 %v3627_v44, %v3601_v40 }
 0x2eb   : > { %v3368_v17 = vpop.f32.mrf.mxu1  ;;  %v3591_v6 = vmax.f32 %v3068_v48, 0.0 }
 0x2ec   : > { %v3323_v9 = vpop.f32.mrf.mxu0  ;;  %v3369_v20 = vadd.f32 %v3368_v17, %v5782_v18  ;;  %v3604_v7 = vmax.f32 %v3367_v22, 0.0  ;;  %v3600_v17 = vmax.f32 %v3281_v34, 0.0  ;;  %v3158_v22 = vadd.f32 %v5780_v5, %v5784_v19 }
 0x2ed   : > { %v3370_v4 = vpop.f32.mrf.mxu1  ;;  %v3324_v16 = vadd.f32 %v3323_v9, %v5782_v18  ;;  %v3238_v9 = vadd.f32 %v3237_v8, %v5782_v18  ;;  %v3195_v8 = vadd.f32 %v5766_v52, %v5782_v18  ;;  %v3070_v34 = vadd.f32 %v5762_v57, %v5784_v19 }
 0x2ee   : > { %v3371_v2 = vadd.f32 %v3370_v4, %v5784_v19  ;;  %v3325_v15 = vpop.f32.mrf.mxu0  ;;  %v3605_v30 = vmax.f32 %v3369_v20, 0.0  ;;  %v3599_v4 = vmax.f32 %v3240_v53, 0.0 }
 0x2ef   : > { %v3372_v23 = vpop.f32.mrf.mxu1  ;;  %v3326_v63 = vadd.f32 %v3325_v15, %v5782_v18  ;;  %v3602_v49 = vmax.f32 %v3324_v16, 0.0  ;;  %v3623_v15 = vmax.f32 %v3201_v12, 0.0  ;;  %v3598_v60 = vmax.f32 %v3238_v9, 0.0 }
 0x2f0   : > { %v3373_v24 = vadd.f32 %v3372_v23, %v5784_v19  ;;  %v3327_v25 = vpop.f32.mrf.mxu0  ;;  %v3630_v26 = vmax.f32 %v3371_v2, 0.0  ;;  %v4730_v2 = vpack.c.bf16 %v3626_v29, %v3600_v17  ;;  %v4729_v23 = vpack.c.bf16 %v3625_v14, %v3599_v4 }
 0x2f1   : > { %v3328_v21 = vadd.f32 %v3327_v25, %v5784_v19  ;;  %v3603_v38 = vmax.f32 %v3326_v63, 0.0  ;;  %v3597_v25 = vmax.f32 %v3197_v10, 0.0  ;;  %v4728_v5 = vpack.c.bf16 %v3624_v3, %v3598_v60 }
 0x2f2   : > { %v3631_v32 = vmax.f32 %v3373_v24, 0.0  ;;  %v3329_v31 = vpop.f32.mrf.mxu0  ;;  %v4734_v37 = vpack.c.bf16 %v3630_v26, %v3604_v7  ;;  %v3154_v26 = vadd.f32 %v5774_v61, %v5782_v18  ;;  %v3152_v7 = vadd.f32 %v5772_v56, %v5782_v18 }
 0x2f3   : > { %v3330_v27 = vadd.f32 %v3329_v31, %v5784_v19  ;;  %v3628_v39 = vmax.f32 %v3328_v21, 0.0  ;;  %v3156_v21 = vadd.f32 %v5778_v1, %v5784_v19  ;;  %v3596_v31 = vmax.f32 %v3195_v8, 0.0 }
 0x2f4   : > { %v4735_v35 = vpack.c.bf16 %v3631_v32, %v3605_v30  ;;  %v4727_v30 = vpack.c.bf16 %v3623_v15, %v3597_v25  ;;  %v3621_v32 = vmax.f32 %v3158_v22, 0.0  ;;  %v3111_v61 = vadd.f32 %v5754_v41, %v5782_v18 }
 0x2f5   : > { %v3629_v43 = vmax.f32 %v3330_v27, 0.0  ;;  %v5800_v46 = vpop.f32.mrf.mxu1  ;;  %v4732_v11 = vpack.c.bf16 %v3628_v39, %v3602_v49  ;;  %v3595_v16 = vmax.f32 %v3154_v26, 0.0  ;;  %v4726_v33 = vpack.c.bf16 %v3622_v50, %v3596_v31 }
 0x2f6   : > { %4033 = vmatprep.subr.bf16.mxu1 %v4735_v35  ;;  %v3620_v36 = vmax.f32 %v3156_v21, 0.0  ;;  %v3619_v35 = vmax.f32 %v3115_v28, 0.0  ;;  %v3109_v41 = vadd.f32 %v5752_v54, %v5782_v18  ;;  %v3593_v44 = vmax.f32 %v3111_v61, 0.0 }
 0x2f7   : > { %v4733_v51 = vpack.c.bf16 %v3629_v43, %v3603_v38  ;;  %4034 = vmatpush1.bf16.msra.mxu1 %v4734_v37  ;;  %v5811_v20 = vpop.f32.mrf.mxu1  ;;  %v3072_v37 = vadd.f32 %v5768_v59, %v5784_v19  ;;  %v4725_v56 = vpack.c.bf16 %v3621_v32, %v3595_v16  ;;  %v3594_v43 = vmax.f32 %v3152_v7, 0.0 }
 0x2f8   : > { %v5802_v55 = vpop.f32.mrf.mxu0  ;;  %v3592_v29 = vmax.f32 %v3109_v41, 0.0  ;;  %v3066_v54 = vadd.f32 %v5756_v42, %v5782_v18  ;;  %v3616_v12 = vmax.f32 %v3070_v34, 0.0  ;;  %v3453_v34 = vadd.f32 %v5800_v46, %v5782_v18 }
 0x2f9   : > { %4035 = vmatprep.subr.bf16.mxu1 %v4733_v51  ;;  %v5823_v63 = vpop.f32.mrf.mxu1  ;;  %v4724_v49 = vpack.c.bf16 %v3620_v36, %v3594_v43  ;;  %v4723_v51 = vpack.c.bf16 %v3619_v35, %v3593_v44  ;;  %v3617_v59 = vmax.f32 %v3072_v37, 0.0 }
 0x2fa   : > { %v5806_v45 = vpop.f32.mrf.mxu0  ;;  %v3590_v17 = vmax.f32 %v3066_v54, 0.0  ;;  %v3457_v41 = vadd.f32 %v5823_v63, %v5784_v19 }
 0x2fb   : > { %4036 = vmatpush1.bf16.msra.mxu1 %v4732_v11  ;;  %v5835_v27 = vpop.f32.mrf.mxu1  ;;  %v4722_v11 = vpack.c.bf16 %v3618_v47, %v3592_v29  ;;  %v4721_v58 = vpack.c.bf16 %v3617_v59, %v3591_v6  ;;  %v3608_v29 = vmax.f32 %v3453_v34, 0.0 }
 0x2fc   : > { %4037 = vmatprep.subr.bf16.mxu1 %v4731_v13  ;;  %v5817_v24 = vpop.f32.mrf.mxu0  ;;  %v4720_v9 = vpack.c.bf16 %v3616_v12, %v3590_v17 }
 0x2fd   : > { %v3414_v63 = vadd.f32 %v5817_v24, %v5784_v19  ;;  %v4834_v24 = vld [vmem:[%s5936_s7 + $0x14] ss:$8 sps:$4 sm:$0xff]  }
 0x2fe   : > { %v5829_v52 = vpop.f32.mrf.mxu0 }
 0x2ff   : > { %4038 = vmatpush1.bf16.msra.mxu1 %v4730_v2  ;;  %v3632_v6 = vmax.f32 %v3414_v63, 0.0 }
 0x300   : > { %4039 = vmatprep.subr.bf16.mxu1 %v4729_v23 }
 0x301   : > { %v3538_v38 = vpop.f32.mrf.mxu1 }
 0x302   : > { %v3539_v28 = vadd.f32 %v3538_v38, %v5782_v18  ;;  %v3455_v38 = vadd.f32 %v5811_v20, %v5782_v18  ;;  %v3412_v20 = vadd.f32 %v5806_v45, %v5782_v18 }
 0x303   : > { %4040 = vmatpush1.bf16.msra.mxu1 %v4728_v5  ;;  %v3540_v40 = vpop.f32.mrf.mxu1 }
 0x304   : > { %4041 = vmatprep.subr.bf16.mxu1 %v4727_v30  ;;  %v5837_v1 = vpop.f32.mrf.mxu0  ;;  %v3541_v23 = vadd.f32 %v3540_v40, %v5782_v18  ;;  %v3612_v37 = vmax.f32 %v3539_v28, 0.0  ;;  %v3607_v46 = vmax.f32 %v3412_v20, 0.0 }
 0x305   : > { %v3542_v13 = vpop.f32.mrf.mxu1 }
 0x306   : > { %v3497_v39 = vpop.f32.mrf.mxu0  ;;  %v3543_v60 = vadd.f32 %v3542_v13, %v5784_v19  ;;  %v3613_v32 = vmax.f32 %v3541_v23, 0.0 }
 0x307   : > { %4042 = vmatpush1.bf16.msra.mxu1 %v4726_v33  ;;  %v3544_v10 = vpop.f32.mrf.mxu1  ;;  %v3498_v31 = vadd.f32 %v3497_v39, %v5782_v18  ;;  %v3459_v33 = vadd.f32 %v5835_v27, %v5784_v19  ;;  %v3416_v27 = vadd.f32 %v5829_v52, %v5784_v19  ;;  %v3410_v52 = vadd.f32 %v5802_v55, %v5782_v18 }
 0x308   : > { %4043 = vmatprep.subr.bf16.mxu1 %v4725_v56  ;;  %v3499_v53 = vpop.f32.mrf.mxu0  ;;  %v3545_v2 = vadd.f32 %v3544_v10, %v5784_v19  ;;  %v3638_v61 = vmax.f32 %v3543_v60, 0.0  ;;  %v3496_v56 = vadd.f32 %v5837_v1, %v5782_v18 }
 0x309   : > { %v3500_v16 = vadd.f32 %v3499_v53, %v5784_v19  ;;  %v3611_v39 = vmax.f32 %v3498_v31, 0.0  ;;  %v3635_v48 = vmax.f32 %v3459_v33, 0.0  ;;  %v3633_v53 = vmax.f32 %v3416_v27, 0.0 }
 0x30a   : > { %v3501_v14 = vpop.f32.mrf.mxu0  ;;  %v3639_v26 = vmax.f32 %v3545_v2, 0.0  ;;  %v4742_v43 = vpack.c.bf16 %v3638_v61, %v3612_v37  ;;  %v3610_v1 = vmax.f32 %v3496_v56, 0.0  ;;  %v3606_v12 = vmax.f32 %v3410_v52, 0.0 }
 0x30b   : > { %4044 = vmatpush1.bf16.msra.mxu1 %v4724_v49  ;;  %v3502_v50 = vadd.f32 %v3501_v14, %v5784_v19  ;;  %v3636_v44 = vmax.f32 %v3500_v16, 0.0  ;;  %v3609_v49 = vmax.f32 %v3455_v38, 0.0  ;;  %v4006_v14 = vpop.permute.xlu1 %4005 }
 0x30c   : > { %4045 = vmatprep.subr.bf16.mxu1 %v4723_v51  ;;  %v4743_v36 = vpack.c.bf16 %v3639_v26, %v3613_v32  ;;  %v3634_v51 = vmax.f32 %v3457_v41, 0.0  ;;  %v4736_v45 = vpack.c.bf16 %v3632_v6, %v3606_v12 }
 0x30d   : > { %v3637_v35 = vmax.f32 %v3502_v50, 0.0  ;;  %v4740_v59 = vpack.c.bf16 %v3636_v44, %v3610_v1  ;;  %v4739_v40 = vpack.c.bf16 %v3635_v48, %v3609_v49 }
 0x30e   : > { %v4738_v54 = vpack.c.bf16 %v3634_v51, %v3608_v29 }
 0x30f   : > { %4046 = vmatpush1.bf16.msra.mxu1 %v4722_v11  ;;  %v4741_v47 = vpack.c.bf16 %v3637_v35, %v3611_v39  ;;  %v4737_v11 = vpack.c.bf16 %v3633_v53, %v3607_v46 }
 0x310   : > { %4047 = vmatprep.subr.bf16.mxu1 %v4721_v58  ;;  %v3581_v57 = vpop.f32.mrf.mxu0 }
 0x311   : > { %v3582_v15 = vadd.f32 %v3581_v57, %v5782_v18  ;;  %v4001_v57 = vpop.permute.xlu0 %4000 }
 0x312   : > { %v3583_v4 = vpop.f32.mrf.mxu0 }
 0x313   : > { %4048 = vmatpush1.bf16.msra.mxu1 %v4720_v9  ;;  %v3584_v42 = vadd.f32 %v3583_v4, %v5782_v18  ;;  %v3614_v30 = vmax.f32 %v3582_v15, 0.0  ;;  %v4836_v18 = vld [vmem:[%s5936_s7 + $0x10] ss:$8 sps:$4 sm:$0xff]   ;;  %v3996_v4 = vpop.permute.xlu1 %3995 }
 0x314   : > { %v3585_v62 = vpop.f32.mrf.mxu0 }
 0x315   : > { %v3586_v3 = vadd.f32 %v3585_v62, %v5784_v19  ;;  %v3615_v21 = vmax.f32 %v3584_v42, 0.0  ;;  %v3991_v15 = vpop.permute.xlu0 %3990 }
 0x316   : > { %v3587_v22 = vpop.f32.mrf.mxu0 }
 0x317   : > { %v3588_v8 = vadd.f32 %v3587_v22, %v5784_v19  ;;  %v3640_v25 = vmax.f32 %v3586_v3, 0.0  ;;  %v4833_v19 = vld [vmem:[%s5936_s7] ss:$8 sps:$4 sm:$0xff]  }
 0x319   : > { %v3641_v5 = vmax.f32 %v3588_v8, 0.0  ;;  %v4744_v0 = vpack.c.bf16 %v3640_v25, %v3614_v30  ;;  %v4103_v35 = vpop.permute.xlu0 %4102 }
 0x31b   : > { %v4745_v7 = vpack.c.bf16 %v3641_v5, %v3615_v21 }
 0x31d   : > { %4055 = vmatprep.subr.bf16.mxu1 %v4745_v7 }
 0x31e   : > { %4056 = vmatpush2.bf16.msra.mxu1 %v4744_v0 }
 0x31f   : > { %4057 = vmatprep.subr.bf16.mxu1 %v4743_v36  ;;  %v4094_v36 = vld [vmem:[%s5938_s9] sm:$0x1] }
 0x322   : > { %4058 = vmatpush2.bf16.msra.mxu1 %v4742_v43 }
 0x323   : > { %4059 = vmatprep.subr.bf16.mxu1 %v4741_v47 }
 0x326   : > { %4060 = vmatpush2.bf16.msra.mxu1 %v4740_v59 }
 0x327   : > { %4061 = vmatprep.subr.bf16.mxu1 %v4739_v40 }
 0x32a   : > { %4062 = vmatpush2.bf16.msra.mxu1 %v4738_v54 }
 0x32b   : > { %4063 = vmatprep.subr.bf16.mxu1 %v4737_v11 }
 0x32e   : > { %4064 = vmatpush2.bf16.msra.mxu1 %v4736_v45 }
 0x331   : > { %4066 = vmatmul.mubr.bf16.vlgmr.msra.gmra.mxu1 %v4833_v19 }
 0x332   : > { %4581 = vmatprep.mubr.msk.bf16.mxu1 %vm4026_vm3, %v4834_v24 }
 0x339   : > { %4076 = vmatmul.mubr.bf16.gmra.mxu1 %v4836_v18 }
 0x3f1   : > { %v4067_v55 = vpop.f32.mrf.mxu1 }
 0x3f2   : > { %v4068_v28 = vadd.f32 %v4067_v55, %v3991_v15 }
 0x3f3   : > { %v4069_v58 = vpop.f32.mrf.mxu1 }
 0x3f4   : > { %v4070_v8 = vadd.f32 %v4069_v58, %v3991_v15  ;;  %v4086_v0 = vmax.f32 %v4068_v28, 0.0 }
 0x3f5   : > { %v4071_v13 = vpop.f32.mrf.mxu1 }
 0x3f6   : > { %v4072_v25 = vadd.f32 %v4071_v13, %v3996_v4  ;;  %v4087_v32 = vmax.f32 %v4070_v8, 0.0 }
 0x3f7   : > { %v4073_v17 = vpop.f32.mrf.mxu1 }
 0x3f8   : > { %v4074_v2 = vadd.f32 %v4073_v17, %v3996_v4  ;;  %v4088_v7 = vmax.f32 %v4072_v25, 0.0 }
 0x3f9   : > { %v4077_v9 = vpop.f32.mrf.mxu1 }
 0x3fa   : > { %v4078_v22 = vadd.f32 %v4077_v9, %v4001_v57  ;;  %v4089_v50 = vmax.f32 %v4074_v2, 0.0  ;;  %v4095_v33 = vpack.c.bf16 %v4088_v7, %v4086_v0 }
 0x3fb   : > { %v4079_v10 = vpop.f32.mrf.mxu1 }
 0x3fc   : > { %v4080_v42 = vadd.f32 %v4079_v10, %v4001_v57  ;;  %v4090_v30 = vmax.f32 %v4078_v22, 0.0  ;;  %v4096_v16 = vpack.c.bf16 %v4089_v50, %v4087_v32 }
 0x3fd   : > { %v4081_v62 = vpop.f32.mrf.mxu1 }
 0x3fe   : > { %v4082_v3 = vadd.f32 %v4081_v62, %v4006_v14  ;;  %v4091_v21 = vmax.f32 %v4080_v42, 0.0 }
 0x3ff   : > { %v4083_v23 = vpop.f32.mrf.mxu1 }
 0x400   : > { %v4084_v60 = vadd.f32 %v4083_v23, %v4006_v14  ;;  %v4092_v26 = vmax.f32 %v4082_v3, 0.0 }
 0x402   : > { %v4093_v5 = vmax.f32 %v4084_v60, 0.0  ;;  %v4097_v61 = vpack.c.bf16 %v4092_v26, %v4090_v30 }
 0x404   : > { %v4098_v31 = vpack.c.bf16 %v4093_v5, %v4091_v21 }
 0x406   : > { %4121 = vmatprep.subr.bf16.mxu0 %v4098_v31 }
 0x407   : > { %4122 = vmatpush1.bf16.msra.mxu0 %v4097_v61 }
 0x408   : > { %4123 = vmatprep.subr.bf16.mxu0 %v4096_v16 }
 0x40b   : > { %4124 = vmatpush1.bf16.msra.mxu0 %v4095_v33 }
 0x40e   : > { %4582 = vmatmul.mubr.msk.bf16.vlgmr.msra.gmra.mxu0 %vm4105_vm4, %v4094_v36 }
 0x4ce   : > { %v4143_v37 = vpop.f32.mrf.mxu0 }
 0x4cf   : > { %v4144_v56 = vadd.f32 %v4143_v37, %v4103_v35 }
 0x4d0   : > { %v4145_v38 = vpop.f32.mrf.mxu0 }
 0x4d1   : > { %v4146_v39 = vadd.f32 %v4145_v38, %v4103_v35  ;;  %v4150_v43 = vmax.f32 %v4144_v56, 0.0 }
 0x4d2   : > { %v4147_v41 = vpop.f32.mrf.mxu0 }
 0x4d3   : > { %v4151_v44 = vmax.f32 %v4146_v39, 0.0 }
 0x4d4   : > { %v4148_v48 = vpop.f32.mrf.mxu0 }
 0x4d5   : > { %v4154_v27 = vcombine.low %v4150_v43, %v4151_v44 }
 0x4d7   : > { %4583 = vst.sshfl [vmem:[%s402_s23] sm:$0x33 pattern:$0x76325410] %v4154_v27 }
 0x4d8   : > { %4878 = shalt.err (!%p4875_p10)
}
 0x4d9   : > { %s4879_s15 = scalar_lea.hbm %s4177_s16, 64  ;;  %s4883_s30 = scalar_lea.hbm %s5940_s11, 128 }
 0x4da   : > { %p4880_p2 = scmp.ne.s32.totalorder %s4177_s16, %s4879_s15  ;;  %p4884_p7 = scmp.lt.s32.totalorder %s4177_s16, %s5940_s11 }
 0x4db   : > { %p4885_p5 = scmp.lt.s32.totalorder %s4883_s30, %s4879_s15 }
 0x4dc   : > { %p4881_p4 = pnand %p4880_p2, %p5960_p12 }
 0x4dd   : > { %p4886_p6 = por %p4885_p5, %p4884_p7 }
 0x4de   : > { %p4882_p9 = pneg %p4881_p4 }
 0x4e0   : > { %p4887_p11 = pnand %p4886_p6, %p4882_p9 }
 0x4e2   : > { %4890 = shalt.err (!%p4887_p11)
}
 0x4e3   : > { %4751 = dma.vmem_to_hbm [thread:$0]  (%p5960_p12), %s4180_s26, 64, %s4177_s16, %s4165_s22  }
 0x4e4 PF: > { %s5961_s23 = sld [smem:[#allocation9_spill]]  ;;  %p5964_p0 = scmp.ge.s32.totalorder %s4929_s20, 2 }
 0x4e5   : > { %s5962_s29 = sld [smem:[#allocation13_spill]] }
 0x4ea   : > { %s4191_s27 = sand.u32 1, %s5961_s23  }
 0x4eb   : > { %p5963_p13 = scmp.ne.s32.totalorder %s5962_s29, 0  ;;  %s4192_s25 = scalar_lea.sflag [#allocation5], %s4191_s27 }
 0x4ed   : > { %p4758_p1 = pnand %p5964_p0, %p5963_p13 }
 0x4ef   : > { %p4759_p3 = pneg %p4758_p1 }
 0x4f1   : > { %4912 = dma.done.wait (%p4759_p3), %s4192_s25, 64  }
 0x4f2   : > { %4914 = vsyncadd (%p4759_p3), %s4192_s25, 4294967232  ;;  %s5965_s20 = sld [smem:[#allocation11_spill]]  ;;  %s5968_s17 = smov %s4921_s18 }
 0x4f3   : > { %s5966_s12 = sld [smem:[#allocation10_spill]] }
 0x4f4   : > { %s5967_s19 = sld [smem:[#allocation12_spill]] }
 0x4f8   : > { %p24_p8 = scmp.ge.s32.totalorder %s5965_s20, 4  }
 0x4f9   : > { %s5969_s18 = smov %s5966_s12 }
 0x4fa   :  { %26 = sbr.rel (!%p24_p8) target bundleno = 5 (0x5), region = 109 }
 0x4ff   :  { %4197 = vsyncpa [#allocation4], 1 }
 0x500   :  { %4199 = vsyncpa [#allocation4 + $0x1], 1 }
 0x501   :  { %4200 = vsyncpa [#allocation5], 1 }
 0x502   :  { %4202 = vsyncpa [#allocation5 + $0x1], 1 }

</bundles_post_ra>
